<compile_context>
chip_gen: v7x
topology: tpu7x:2x2x1
jax: 0.10.0
libtpu: 0.0.40
codegen_flags: <defaults>
</compile_context>

<pallas_src>
import numpy as np

import jax
import jax.numpy as jnp
from jax.experimental import pallas as pl
from jax.experimental.pallas import tpu as pltpu


def _round_up(n, m):
    return -(-n // m) * m


# ----------------------------------------------------------------------------
# Fused kernel
# ----------------------------------------------------------------------------
def _tap(phase, k):
    """For a 3x3/stride-2 conv written over a 2x2 space-to-depth input:
    output parity `phase`, tap index `k` (a or b)  ->  (input parity, +row)."""
    par = (phase + k + 1) % 2
    delta = 0 if (phase == 0 and k == 0) else 1
    return par, delta


def _stem_kernel(xp_ref, mask_ref, w1_ref, s1_ref, w2_ref, s2_ref, o_ref, ys_ref):
    # xp_ref  : (1, 4, LX, 4*cin) bf16  4x4-phase-split, flattened s2d input
    # mask_ref: (4, Mpad, 1)      f32   per-plane validity mask (pad ring -> 0)
    # w1_ref  : (16*cin, mid)     bf16  conv1 per-tap weights, BN1 scale folded
    # s1_ref  : (1, mid)          f32   conv1 bias + BN1 shift
    # w2_ref  : (9*mid, out_c)    bf16  conv2 per-tap weights, BN2 scale folded
    # s2_ref  : (1, out_c)        f32   conv2 bias + BN2 shift
    # o_ref   : (1, H2, W2, out_c) f32
    # ys_ref  : (4, LY, mid)      bf16  VMEM scratch: parity planes of padded y1
    H2, W2, out_c = o_ref.shape[1], o_ref.shape[2], o_ref.shape[3]
    mid = ys_ref.shape[2]
    cin4 = xp_ref.shape[3]                 # = 4 * in_chans
    WP = W2 + 2                            # common flattening width
    M1 = (H2 + 1) * WP                     # flattened rows of one y1 plane
    LY = ys_ref.shape[1]
    inv_sqrt2 = 0.7071067811865476

    # Hygiene: zero the scratch tail rows that stage-2's shifted reads can
    # touch (they only ever feed discarded garbage columns).
    ys_ref[:, M1:, :] = jnp.zeros((4, LY - M1, mid), ys_ref.dtype)

    # Keep the f32 accumulators small (review: bound vreg pressure).
    row_chunk = max(1, 512 // WP)

    # --- stage 1: conv1 + BN1 + exact GELU --------------------------------
    # Written directly as the four (row, col)-parity planes of the zero-padded
    # conv1 output == conv2's space-to-depth input, resident in VMEM.
    for du in (0, 1):
        for p in (0, 1):
            plane = 2 * du + p
            for i0 in range(0, H2 + 1, row_chunk):
                ni = min(row_chunk, H2 + 1 - i0)
                m0, mlen = i0 * WP, ni * WP
                acc = jnp.zeros((mlen, mid), jnp.float32)
                for t, (a, b) in enumerate(((0, 0), (0, 1), (1, 0), (1, 1))):
                    er, dr = _tap(du, a)
                    ec, dc = _tap(p, b)
                    off = dr * WP + dc + m0
                    xt = xp_ref[0, 2 * er + ec, off:off + mlen, :]
                    acc += jnp.dot(xt, w1_ref[t * cin4:(t + 1) * cin4, :],
                                   preferred_element_type=jnp.float32)
                y = acc + s1_ref[...]
                y = 0.5 * y * (1.0 + jax.lax.erf(y * inv_sqrt2))  # torch GELU
                y = y * mask_ref[plane, m0:m0 + mlen, :]          # zero pad ring
                ys_ref[plane, m0:m0 + mlen, :] = y.astype(ys_ref.dtype)

    # --- stage 2: conv2 + BN2 on the VMEM-resident planes ------------------
    taps2 = [(kh, kw) for kh in range(3) for kw in range(3)]
    for r0 in range(0, H2, row_chunk):
        nr = min(row_chunk, H2 - r0)
        m0, mlen = r0 * WP, nr * WP
        acc = jnp.zeros((mlen, out_c), jnp.float32)
        for t, (kh, kw) in enumerate(taps2):
            plane = 2 * (kh % 2) + (kw % 2)
            off = (kh // 2) * WP + (kw // 2) + m0
            yt = ys_ref[plane, off:off + mlen, :]
            acc += jnp.dot(yt, w2_ref[t * mid:(t + 1) * mid, :],
                           preferred_element_type=jnp.float32)
        y2 = acc + s2_ref[...]
        for r2 in range(r0, r0 + nr):                    # drop garbage columns
            lo = (r2 - r0) * WP
            o_ref[0, r2, :, :] = y2[lo:lo + W2, :].astype(o_ref.dtype)


# ----------------------------------------------------------------------------
# Host-side parameter / input preparation (cheap, smallest tensors only)
# ----------------------------------------------------------------------------
def _fold_bn(bias, gamma, beta, mean, var, eps=1e-5):
    scale = gamma / jnp.sqrt(var + eps)
    shift = (bias - mean) * scale + beta
    return scale, shift


def _conv1_weight_cat(w_oihw, scale):
    """(mid, cin, 3, 3) conv1 weight (BN scale folded) -> (16*cin, mid) bf16.
    Row order: tap (a, b) in [(0,0),(0,1),(1,0),(1,1)], within tap (di, dj, c)."""
    cout, cin = w_oihw.shape[:2]
    w = jnp.transpose(w_oihw * scale[:, None, None, None], (2, 3, 1, 0))  # kh kw c m
    blocks = []
    for a in (0, 1):
        for b in (0, 1):
            blk = jnp.zeros((2, 2, cin, cout), jnp.float32)
            for di in (0, 1):
                for dj in (0, 1):
                    kh, kw = 2 * a + di, 2 * b + dj
                    if kh <= 2 and kw <= 2:
                        blk = blk.at[di, dj].set(w[kh, kw])
            blocks.append(blk.reshape(4 * cin, cout))
    return jnp.concatenate(blocks, axis=0).astype(jnp.bfloat16)


def _conv2_weight_cat(w_oihw, scale):
    """(out_c, mid, 3, 3) conv2 weight (BN scale folded) -> (9*mid, out_c) bf16.
    Row order: tap (kh, kw), kh-major."""
    w = jnp.transpose(w_oihw * scale[:, None, None, None], (2, 3, 1, 0))  # kh kw m o
    blocks = [w[kh, kw] for kh in range(3) for kw in range(3)]
    return jnp.concatenate(blocks, axis=0).astype(jnp.bfloat16)


def _prep_input(x_nhwc, H2, W2):
    """conv1 pad(1) + 4x4 phase-split space-to-depth, flattened per phase.
    Returns (N, 4, LX, 4*C) bf16 with phase = 2*er + ec and flat row i*NJ + j,
    where element [er, ec, i, j, (di, dj, c)] = xpad[4*(i-1)+2*er+di,
                                                     4*(j-1)+2*ec+dj, c]."""
    N, H, W, C = x_nhwc.shape
    NI, NJ = H2 + 2, W2 + 2
    Hq, Wq = 4 * NI, 4 * NJ
    xq = jnp.pad(x_nhwc, ((0, 0), (5, Hq - H - 5), (5, Wq - W - 5), (0, 0)))
    xq = xq.reshape(N, NI, 2, 2, NJ, 2, 2, C)            # n, i, er, di, j, ec, dj, c
    xq = jnp.transpose(xq, (0, 2, 5, 1, 4, 3, 6, 7))     # n, er, ec, i, j, di, dj, c
    xq = xq.reshape(N, 4, NI * NJ, 4 * C)
    LX = _round_up(NI * NJ + 1, 8)
    xq = jnp.pad(xq, ((0, 0), (0, 0), (0, LX - NI * NJ), (0, 0)))
    return xq.astype(jnp.bfloat16)


def _plane_masks(H1, W1, H2, W2):
    """Validity (1.0/0.0) of each flattened position of each y1 parity plane."""
    WP = W2 + 2
    M1 = (H2 + 1) * WP
    Mpad = _round_up(M1, 8)
    idx = np.arange(M1)
    i2, t = idx // WP, idx % WP
    planes = []
    for du in (0, 1):
        for p in (0, 1):
            row, col = 2 * i2 + du, 2 * t + p
            ok = (row >= 1) & (row <= H1) & (col >= 1) & (col <= W1)
            planes.append(ok.astype(np.float32))
    m = np.stack(planes, 0)[:, :, None]
    m = np.pad(m, ((0, 0), (0, Mpad - M1), (0, 0)))
    return jnp.asarray(m)


# ----------------------------------------------------------------------------
# Forward pass
# ----------------------------------------------------------------------------
def stem_layer_forward(x_nchw, raw_params):
    """Pallas-backed StemLayer forward.  Input NCHW, output NHWC (channels_last)."""
    w1, b1, bn1, w2, b2, bn2 = raw_params
    mid, cin = w1.shape[0], w1.shape[1]
    out_c = w2.shape[0]
    N, _, H, W = x_nchw.shape
    H1, W1 = (H - 1) // 2 + 1, (W - 1) // 2 + 1
    H2, W2 = (H1 - 1) // 2 + 1, (W1 - 1) // 2 + 1
    WP = W2 + 2
    M1, M2 = (H2 + 1) * WP, H2 * WP
    LY = _round_up(M1 + 1, 8)

    s1, sh1 = _fold_bn(b1, *bn1)
    s2, sh2 = _fold_bn(b2, *bn2)
    w1c = _conv1_weight_cat(w1, s1)                       # (16*cin, mid)
    w2c = _conv2_weight_cat(w2, s2)                       # (9*mid, out_c)
    sh1 = sh1.reshape(1, mid).astype(jnp.float32)
    sh2 = sh2.reshape(1, out_c).astype(jnp.float32)

    x_nhwc = jnp.transpose(x_nchw, (0, 2, 3, 1))          # NCHW -> NHWC
    xq = _prep_input(x_nhwc, H2, W2)                      # (N, 4, LX, 4*cin)
    LX = xq.shape[2]
    masks = _plane_masks(H1, W1, H2, W2)                  # (4, Mpad, 1)
    Mpad = masks.shape[1]

    cost = pl.CostEstimate(
        flops=2 * N * (4 * M1 * 16 * cin * mid + M2 * 9 * mid * out_c),
        transcendentals=4 * N * M1 * mid,
        bytes_accessed=int(2 * xq.size + 2 * w1c.size + 2 * w2c.size
                           + 4 * (sh1.size + sh2.size + masks.size)
                           + 4 * N * H2 * W2 * out_c),
    )

    return pl.pallas_call(
        _stem_kernel,
        out_shape=jax.ShapeDtypeStruct((N, H2, W2, out_c), jnp.float32),
        grid=(N,),
        in_specs=[
            pl.BlockSpec((1, 4, LX, 4 * cin), lambda n: (n, 0, 0, 0)),
            pl.BlockSpec((4, Mpad, 1), lambda n: (0, 0, 0)),
            pl.BlockSpec((16 * cin, mid), lambda n: (0, 0)),
            pl.BlockSpec((1, mid), lambda n: (0, 0)),
            pl.BlockSpec((9 * mid, out_c), lambda n: (0, 0)),
            pl.BlockSpec((1, out_c), lambda n: (0, 0)),
        ],
        out_specs=pl.BlockSpec((1, H2, W2, out_c), lambda n: (n, 0, 0, 0)),
        scratch_shapes=[pltpu.VMEM((4, LY, mid), jnp.bfloat16)],
        compiler_params=pltpu.CompilerParams(
            dimension_semantics=("parallel",),
            vmem_limit_bytes=32 * 1024 * 1024,   # safe on v5e/v6e/v7x, >> needed
        ),
        cost_estimate=cost,
    )(xq, masks, w1c, sh1, w2c, sh2)


# ----------------------------------------------------------------------------
# Parameter init + pure-JAX reference (correctness check only)
# ----------------------------------------------------------------------------
def init_stem_params(key, in_chans=4, out_chans=96):
    mid = out_chans // 2
    ks = jax.random.split(key, 12)

    def conv_init(kw, kb, cin, cout):
        bound = 1.0 / jnp.sqrt(cin * 9.0)
        w = jax.random.uniform(kw, (cout, cin, 3, 3), jnp.float32, -bound, bound)
        b = jax.random.uniform(kb, (cout,), jnp.float32, -bound, bound)
        return w, b

    def bn_init(kg, kb, km, kv, c):
        gamma = 1.0 + 0.1 * jax.random.normal(kg, (c,), jnp.float32)
        beta = 0.1 * jax.random.normal(kb, (c,), jnp.float32)
        mean = 0.1 * jax.random.normal(km, (c,), jnp.float32)
        var = 1.0 + 0.1 * jnp.abs(jax.random.normal(kv, (c,), jnp.float32))
        return gamma, beta, mean, var

    w1, b1 = conv_init(ks[0], ks[1], in_chans, mid)
    bn1 = bn_init(ks[2], ks[3], ks[4], ks[5], mid)
    w2, b2 = conv_init(ks[6], ks[7], mid, out_chans)
    bn2 = bn_init(ks[8], ks[9], ks[10], ks[11], out_chans)
    return (w1, b1, bn1, w2, b2, bn2)


def reference_forward(x_nchw, raw_params):
    w1, b1, bn1, w2, b2, bn2 = raw_params

    def conv(x, w, b):
        y = jax.lax.conv_general_dilated(
            x, w, window_strides=(2, 2), padding=((1, 1), (1, 1)),
            dimension_numbers=('NCHW', 'OIHW', 'NCHW'))
        return y + b[None, :, None, None]

    def bn(x, gamma, beta, mean, var, eps=1e-5):
        inv = gamma / jnp.sqrt(var + eps)
        return (x - mean[None, :, None, None]) * inv[None, :, None, None] \
            + beta[None, :, None, None]

    y = conv(x_nchw.astype(jnp.float32), w1, b1)
    y = bn(y, *bn1)
    y = jax.nn.gelu(y, approximate=False)
    y = conv(y, w2, b2)
    y = bn(y, *bn2)
    return jnp.transpose(y, (0, 2, 3, 1))   # channels_last


if __name__ == "__main__":
    key = jax.random.PRNGKey(0)
    kx, kp = jax.random.split(key)

    in_chans, out_chans = 4, 96
    x = jax.random.normal(kx, (2, in_chans, 16, 16), dtype=jnp.float32)  # NCHW
    params = init_stem_params(kp, in_chans=in_chans, out_chans=out_chans)

    fwd = jax.jit(stem_layer_forward)
    out = jax.block_until_ready(fwd(x, params))
    assert out.shape == (2, 4, 4, out_chans), out.shape

    ref = jax.block_until_ready(reference_forward(x, params))
    # NOTE: eval-mode BatchNorm folded into weights/shift; activation/weight
    # streams are bf16 with f32 accumulation -> loose tolerance.
    max_err = float(jnp.max(jnp.abs(out - ref)))
    assert jnp.allclose(out, ref, rtol=2e-2, atol=2e-2), max_err

    print("KERNEL_OK")
</pallas_src>

<mosaic_0001>
module attributes {stable_mosaic.version = 11 : i64} {
  func.func @_stem_kernel(%arg0: i32, %arg1: memref<1x4x40x16xbf16, #tpu.memory_space<vmem>>, %arg2: memref<4x32x1xf32, #tpu.memory_space<vmem>>, %arg3: memref<64x48xbf16, #tpu.memory_space<vmem>>, %arg4: memref<1x48xf32, #tpu.memory_space<vmem>>, %arg5: memref<432x96xbf16, #tpu.memory_space<vmem>>, %arg6: memref<1x96xf32, #tpu.memory_space<vmem>>, %arg7: memref<1x4x4x96xf32, #tpu.memory_space<vmem>>, %arg8: memref<4x32x48xbf16, #tpu.memory_space<vmem>>) attributes {dimension_semantics = [#tpu.dimension_semantics<parallel>], iteration_bounds = array<i64: 2>, scalar_prefetch = 0 : i64, scratch_operands = 1 : i64, tpu.core_type = #tpu.core_type<tc>, window_params = [{transform_indices = @transform_0, window_bounds = array<i64: 1, 4, 40, 16>}, {pipeline_mode = #tpu.pipeline_mode<synchronous>, transform_indices = @transform_1, window_bounds = array<i64: 4, 32, 1>}, {pipeline_mode = #tpu.pipeline_mode<synchronous>, transform_indices = @transform_2, window_bounds = array<i64: 64, 48>}, {pipeline_mode = #tpu.pipeline_mode<synchronous>, transform_indices = @transform_3, window_bounds = array<i64: 1, 48>}, {pipeline_mode = #tpu.pipeline_mode<synchronous>, transform_indices = @transform_4, window_bounds = array<i64: 432, 96>}, {pipeline_mode = #tpu.pipeline_mode<synchronous>, transform_indices = @transform_5, window_bounds = array<i64: 1, 96>}, {transform_indices = @transform_6, window_bounds = array<i64: 1, 4, 4, 96>}]} {
    %cst = arith.constant 0.000000e+00 : bf16
    %0 = vector.broadcast %cst : bf16 to vector<4x2x48xbf16>
    %c0 = arith.constant 0 : index
    %c30 = arith.constant 30 : index
    %c0_0 = arith.constant 0 : index
    %1 = vector.load %arg8[%c0, %c30, %c0_0] : memref<4x32x48xbf16, #tpu.memory_space<vmem>>, vector<4x2x48xbf16>
    tpu.vector_store %arg8[%c0, %c30, %c0_0], %0 {strides = array<i32>} : memref<4x32x48xbf16, #tpu.memory_space<vmem>>, vector<4x2x48xbf16>,
    %cst_1 = arith.constant 0.000000e+00 : f32
    %2 = vector.broadcast %cst_1 : f32 to vector<30x48xf32>
    %c0_2 = arith.constant 0 : index
    %c3 = arith.constant 3 : index
    %c0_3 = arith.constant 0 : index
    %c0_4 = arith.constant 0 : index
    %3 = vector.load %arg1[%c0_2, %c3, %c0_3, %c0_4] : memref<1x4x40x16xbf16, #tpu.memory_space<vmem>>, vector<1x1x30x16xbf16>
    %4 = vector.shape_cast %3 : vector<1x1x30x16xbf16> to vector<30x16xbf16>
    %c0_5 = arith.constant 0 : index
    %c0_6 = arith.constant 0 : index
    %5 = vector.load %arg3[%c0_5, %c0_6] : memref<64x48xbf16, #tpu.memory_space<vmem>>, vector<16x48xbf16>
    %cst_7 = arith.constant dense<0.000000e+00> : vector<30x48xf32>
    %6 = tpu.matmul %4, %5, %cst_7 {dimension_numbers = #tpu.dot_dimension_numbers<[1], [0], [0], [1], [0, 0, 1, 1], [], []>} : vector<30x16xbf16>, vector<16x48xbf16>, vector<30x48xf32> -> vector<30x48xf32>
    %7 = arith.addf %2, %6 : vector<30x48xf32>
    %c0_8 = arith.constant 0 : index
    %c2 = arith.constant 2 : index
    %c1 = arith.constant 1 : index
    %c0_9 = arith.constant 0 : index
    %8 = vector.load %arg1[%c0_8, %c2, %c1, %c0_9] : memref<1x4x40x16xbf16, #tpu.memory_space<vmem>>, vector<1x1x30x16xbf16>
    %9 = vector.shape_cast %8 : vector<1x1x30x16xbf16> to vector<30x16xbf16>
    %c16 = arith.constant 16 : index
    %c0_10 = arith.constant 0 : index
    %10 = vector.load %arg3[%c16, %c0_10] : memref<64x48xbf16, #tpu.memory_space<vmem>>, vector<16x48xbf16>
    %cst_11 = arith.constant dense<0.000000e+00> : vector<30x48xf32>
    %11 = tpu.matmul %9, %10, %cst_11 {dimension_numbers = #tpu.dot_dimension_numbers<[1], [0], [0], [1], [0, 0, 1, 1], [], []>} : vector<30x16xbf16>, vector<16x48xbf16>, vector<30x48xf32> -> vector<30x48xf32>
    %12 = arith.addf %7, %11 : vector<30x48xf32>
    %c0_12 = arith.constant 0 : index
    %c1_13 = arith.constant 1 : index
    %c6 = arith.constant 6 : index
    %c0_14 = arith.constant 0 : index
    %13 = vector.load %arg1[%c0_12, %c1_13, %c6, %c0_14] : memref<1x4x40x16xbf16, #tpu.memory_space<vmem>>, vector<1x1x30x16xbf16>
    %14 = vector.shape_cast %13 : vector<1x1x30x16xbf16> to vector<30x16xbf16>
    %c32 = arith.constant 32 : index
    %c0_15 = arith.constant 0 : index
    %15 = vector.load %arg3[%c32, %c0_15] : memref<64x48xbf16, #tpu.memory_space<vmem>>, vector<16x48xbf16>
    %cst_16 = arith.constant dense<0.000000e+00> : vector<30x48xf32>
    %16 = tpu.matmul %14, %15, %cst_16 {dimension_numbers = #tpu.dot_dimension_numbers<[1], [0], [0], [1], [0, 0, 1, 1], [], []>} : vector<30x16xbf16>, vector<16x48xbf16>, vector<30x48xf32> -> vector<30x48xf32>
    %17 = arith.addf %12, %16 : vector<30x48xf32>
    %c0_17 = arith.constant 0 : index
    %c0_18 = arith.constant 0 : index
    %c7 = arith.constant 7 : index
    %c0_19 = arith.constant 0 : index
    %18 = vector.load %arg1[%c0_17, %c0_18, %c7, %c0_19] : memref<1x4x40x16xbf16, #tpu.memory_space<vmem>>, vector<1x1x30x16xbf16>
    %19 = vector.shape_cast %18 : vector<1x1x30x16xbf16> to vector<30x16xbf16>
    %c48 = arith.constant 48 : index
    %c0_20 = arith.constant 0 : index
    %20 = vector.load %arg3[%c48, %c0_20] : memref<64x48xbf16, #tpu.memory_space<vmem>>, vector<16x48xbf16>
    %cst_21 = arith.constant dense<0.000000e+00> : vector<30x48xf32>
    %21 = tpu.matmul %19, %20, %cst_21 {dimension_numbers = #tpu.dot_dimension_numbers<[1], [0], [0], [1], [0, 0, 1, 1], [], []>} : vector<30x16xbf16>, vector<16x48xbf16>, vector<30x48xf32> -> vector<30x48xf32>
    %22 = arith.addf %17, %21 : vector<30x48xf32>
    %c0_22 = arith.constant 0 : index
    %c0_23 = arith.constant 0 : index
    %23 = vector.load %arg4[%c0_22, %c0_23] : memref<1x48xf32, #tpu.memory_space<vmem>>, vector<1x48xf32>
    %24 = vector.broadcast %23 : vector<1x48xf32> to vector<30x48xf32>
    %25 = arith.addf %22, %24 : vector<30x48xf32>
    %cst_24 = arith.constant 5.000000e-01 : f32
    %26 = vector.broadcast %cst_24 : f32 to vector<30x48xf32>
    %27 = arith.mulf %26, %25 : vector<30x48xf32>
    %cst_25 = arith.constant 0.707106769 : f32
    %28 = vector.broadcast %cst_25 : f32 to vector<30x48xf32>
    %29 = arith.mulf %25, %28 : vector<30x48xf32>
    %30 = math.erf %29 : vector<30x48xf32>
    %cst_26 = arith.constant 1.000000e+00 : f32
    %31 = vector.broadcast %cst_26 : f32 to vector<30x48xf32>
    %32 = arith.addf %31, %30 : vector<30x48xf32>
    %33 = arith.mulf %27, %32 : vector<30x48xf32>
    %c0_27 = arith.constant 0 : index
    %c0_28 = arith.constant 0 : index
    %c0_29 = arith.constant 0 : index
    %34 = vector.load %arg2[%c0_27, %c0_28, %c0_29] : memref<4x32x1xf32, #tpu.memory_space<vmem>>, vector<1x30x1xf32>
    %35 = vector.shape_cast %34 : vector<1x30x1xf32> to vector<30x1xf32>
    %36 = vector.broadcast %35 : vector<30x1xf32> to vector<30x48xf32>
    %37 = arith.mulf %33, %36 : vector<30x48xf32>
    %38 = arith.truncf %37 : vector<30x48xf32> to vector<30x48xbf16>
    %c0_30 = arith.constant 0 : index
    %c0_31 = arith.constant 0 : index
    %c0_32 = arith.constant 0 : index
    %39 = vector.load %arg8[%c0_30, %c0_31, %c0_32] : memref<4x32x48xbf16, #tpu.memory_space<vmem>>, vector<1x30x48xbf16>
    %40 = vector.shape_cast %39 : vector<1x30x48xbf16> to vector<30x48xbf16>
    %41 = vector.shape_cast %38 : vector<30x48xbf16> to vector<1x30x48xbf16>
    tpu.vector_store %arg8[%c0_30, %c0_31, %c0_32], %41 {strides = array<i32>} : memref<4x32x48xbf16, #tpu.memory_space<vmem>>, vector<1x30x48xbf16>,
    %cst_33 = arith.constant 0.000000e+00 : f32
    %42 = vector.broadcast %cst_33 : f32 to vector<30x48xf32>
    %c0_34 = arith.constant 0 : index
    %c2_35 = arith.constant 2 : index
    %c1_36 = arith.constant 1 : index
    %c0_37 = arith.constant 0 : index
    %43 = vector.load %arg1[%c0_34, %c2_35, %c1_36, %c0_37] : memref<1x4x40x16xbf16, #tpu.memory_space<vmem>>, vector<1x1x30x16xbf16>
    %44 = vector.shape_cast %43 : vector<1x1x30x16xbf16> to vector<30x16xbf16>
    %c0_38 = arith.constant 0 : index
    %c0_39 = arith.constant 0 : index
    %45 = vector.load %arg3[%c0_38, %c0_39] : memref<64x48xbf16, #tpu.memory_space<vmem>>, vector<16x48xbf16>
    %cst_40 = arith.constant dense<0.000000e+00> : vector<30x48xf32>
    %46 = tpu.matmul %44, %45, %cst_40 {dimension_numbers = #tpu.dot_dimension_numbers<[1], [0], [0], [1], [0, 0, 1, 1], [], []>} : vector<30x16xbf16>, vector<16x48xbf16>, vector<30x48xf32> -> vector<30x48xf32>
    %47 = arith.addf %42, %46 : vector<30x48xf32>
    %c0_41 = arith.constant 0 : index
    %c3_42 = arith.constant 3 : index
    %c1_43 = arith.constant 1 : index
    %c0_44 = arith.constant 0 : index
    %48 = vector.load %arg1[%c0_41, %c3_42, %c1_43, %c0_44] : memref<1x4x40x16xbf16, #tpu.memory_space<vmem>>, vector<1x1x30x16xbf16>
    %49 = vector.shape_cast %48 : vector<1x1x30x16xbf16> to vector<30x16xbf16>
    %c16_45 = arith.constant 16 : index
    %c0_46 = arith.constant 0 : index
    %50 = vector.load %arg3[%c16_45, %c0_46] : memref<64x48xbf16, #tpu.memory_space<vmem>>, vector<16x48xbf16>
    %cst_47 = arith.constant dense<0.000000e+00> : vector<30x48xf32>
    %51 = tpu.matmul %49, %50, %cst_47 {dimension_numbers = #tpu.dot_dimension_numbers<[1], [0], [0], [1], [0, 0, 1, 1], [], []>} : vector<30x16xbf16>, vector<16x48xbf16>, vector<30x48xf32> -> vector<30x48xf32>
    %52 = arith.addf %47, %51 : vector<30x48xf32>
    %c0_48 = arith.constant 0 : index
    %c0_49 = arith.constant 0 : index
    %c7_50 = arith.constant 7 : index
    %c0_51 = arith.constant 0 : index
    %53 = vector.load %arg1[%c0_48, %c0_49, %c7_50, %c0_51] : memref<1x4x40x16xbf16, #tpu.memory_space<vmem>>, vector<1x1x30x16xbf16>
    %54 = vector.shape_cast %53 : vector<1x1x30x16xbf16> to vector<30x16xbf16>
    %c32_52 = arith.constant 32 : index
    %c0_53 = arith.constant 0 : index
    %55 = vector.load %arg3[%c32_52, %c0_53] : memref<64x48xbf16, #tpu.memory_space<vmem>>, vector<16x48xbf16>
    %cst_54 = arith.constant dense<0.000000e+00> : vector<30x48xf32>
    %56 = tpu.matmul %54, %55, %cst_54 {dimension_numbers = #tpu.dot_dimension_numbers<[1], [0], [0], [1], [0, 0, 1, 1], [], []>} : vector<30x16xbf16>, vector<16x48xbf16>, vector<30x48xf32> -> vector<30x48xf32>
    %57 = arith.addf %52, %56 : vector<30x48xf32>
    %c0_55 = arith.constant 0 : index
    %c1_56 = arith.constant 1 : index
    %c7_57 = arith.constant 7 : index
    %c0_58 = arith.constant 0 : index
    %58 = vector.load %arg1[%c0_55, %c1_56, %c7_57, %c0_58] : memref<1x4x40x16xbf16, #tpu.memory_space<vmem>>, vector<1x1x30x16xbf16>
    %59 = vector.shape_cast %58 : vector<1x1x30x16xbf16> to vector<30x16xbf16>
    %c48_59 = arith.constant 48 : index
    %c0_60 = arith.constant 0 : index
    %60 = vector.load %arg3[%c48_59, %c0_60] : memref<64x48xbf16, #tpu.memory_space<vmem>>, vector<16x48xbf16>
    %cst_61 = arith.constant dense<0.000000e+00> : vector<30x48xf32>
    %61 = tpu.matmul %59, %60, %cst_61 {dimension_numbers = #tpu.dot_dimension_numbers<[1], [0], [0], [1], [0, 0, 1, 1], [], []>} : vector<30x16xbf16>, vector<16x48xbf16>, vector<30x48xf32> -> vector<30x48xf32>
    %62 = arith.addf %57, %61 : vector<30x48xf32>
    %c0_62 = arith.constant 0 : index
    %c0_63 = arith.constant 0 : index
    %63 = vector.load %arg4[%c0_62, %c0_63] : memref<1x48xf32, #tpu.memory_space<vmem>>, vector<1x48xf32>
    %64 = vector.broadcast %63 : vector<1x48xf32> to vector<30x48xf32>
    %65 = arith.addf %62, %64 : vector<30x48xf32>
    %cst_64 = arith.constant 5.000000e-01 : f32
    %66 = vector.broadcast %cst_64 : f32 to vector<30x48xf32>
    %67 = arith.mulf %66, %65 : vector<30x48xf32>
    %cst_65 = arith.constant 0.707106769 : f32
    %68 = vector.broadcast %cst_65 : f32 to vector<30x48xf32>
    %69 = arith.mulf %65, %68 : vector<30x48xf32>
    %70 = math.erf %69 : vector<30x48xf32>
    %cst_66 = arith.constant 1.000000e+00 : f32
    %71 = vector.broadcast %cst_66 : f32 to vector<30x48xf32>
    %72 = arith.addf %71, %70 : vector<30x48xf32>
    %73 = arith.mulf %67, %72 : vector<30x48xf32>
    %c1_67 = arith.constant 1 : index
    %c0_68 = arith.constant 0 : index
    %c0_69 = arith.constant 0 : index
    %74 = vector.load %arg2[%c1_67, %c0_68, %c0_69] : memref<4x32x1xf32, #tpu.memory_space<vmem>>, vector<1x30x1xf32>
    %75 = vector.shape_cast %74 : vector<1x30x1xf32> to vector<30x1xf32>
    %76 = vector.broadcast %75 : vector<30x1xf32> to vector<30x48xf32>
    %77 = arith.mulf %73, %76 : vector<30x48xf32>
    %78 = arith.truncf %77 : vector<30x48xf32> to vector<30x48xbf16>
    %c1_70 = arith.constant 1 : index
    %c0_71 = arith.constant 0 : index
    %c0_72 = arith.constant 0 : index
    %79 = vector.load %arg8[%c1_70, %c0_71, %c0_72] : memref<4x32x48xbf16, #tpu.memory_space<vmem>>, vector<1x30x48xbf16>
    %80 = vector.shape_cast %79 : vector<1x30x48xbf16> to vector<30x48xbf16>
    %81 = vector.shape_cast %78 : vector<30x48xbf16> to vector<1x30x48xbf16>
    tpu.vector_store %arg8[%c1_70, %c0_71, %c0_72], %81 {strides = array<i32>} : memref<4x32x48xbf16, #tpu.memory_space<vmem>>, vector<1x30x48xbf16>,
    %cst_73 = arith.constant 0.000000e+00 : f32
    %82 = vector.broadcast %cst_73 : f32 to vector<30x48xf32>
    %c0_74 = arith.constant 0 : index
    %c1_75 = arith.constant 1 : index
    %c6_76 = arith.constant 6 : index
    %c0_77 = arith.constant 0 : index
    %83 = vector.load %arg1[%c0_74, %c1_75, %c6_76, %c0_77] : memref<1x4x40x16xbf16, #tpu.memory_space<vmem>>, vector<1x1x30x16xbf16>
    %84 = vector.shape_cast %83 : vector<1x1x30x16xbf16> to vector<30x16xbf16>
    %c0_78 = arith.constant 0 : index
    %c0_79 = arith.constant 0 : index
    %85 = vector.load %arg3[%c0_78, %c0_79] : memref<64x48xbf16, #tpu.memory_space<vmem>>, vector<16x48xbf16>
    %cst_80 = arith.constant dense<0.000000e+00> : vector<30x48xf32>
    %86 = tpu.matmul %84, %85, %cst_80 {dimension_numbers = #tpu.dot_dimension_numbers<[1], [0], [0], [1], [0, 0, 1, 1], [], []>} : vector<30x16xbf16>, vector<16x48xbf16>, vector<30x48xf32> -> vector<30x48xf32>
    %87 = arith.addf %82, %86 : vector<30x48xf32>
    %c0_81 = arith.constant 0 : index
    %c0_82 = arith.constant 0 : index
    %c7_83 = arith.constant 7 : index
    %c0_84 = arith.constant 0 : index
    %88 = vector.load %arg1[%c0_81, %c0_82, %c7_83, %c0_84] : memref<1x4x40x16xbf16, #tpu.memory_space<vmem>>, vector<1x1x30x16xbf16>
    %89 = vector.shape_cast %88 : vector<1x1x30x16xbf16> to vector<30x16xbf16>
    %c16_85 = arith.constant 16 : index
    %c0_86 = arith.constant 0 : index
    %90 = vector.load %arg3[%c16_85, %c0_86] : memref<64x48xbf16, #tpu.memory_space<vmem>>, vector<16x48xbf16>
    %cst_87 = arith.constant dense<0.000000e+00> : vector<30x48xf32>
    %91 = tpu.matmul %89, %90, %cst_87 {dimension_numbers = #tpu.dot_dimension_numbers<[1], [0], [0], [1], [0, 0, 1, 1], [], []>} : vector<30x16xbf16>, vector<16x48xbf16>, vector<30x48xf32> -> vector<30x48xf32>
    %92 = arith.addf %87, %91 : vector<30x48xf32>
    %c0_88 = arith.constant 0 : index
    %c3_89 = arith.constant 3 : index
    %c6_90 = arith.constant 6 : index
    %c0_91 = arith.constant 0 : index
    %93 = vector.load %arg1[%c0_88, %c3_89, %c6_90, %c0_91] : memref<1x4x40x16xbf16, #tpu.memory_space<vmem>>, vector<1x1x30x16xbf16>
    %94 = vector.shape_cast %93 : vector<1x1x30x16xbf16> to vector<30x16xbf16>
    %c32_92 = arith.constant 32 : index
    %c0_93 = arith.constant 0 : index
    %95 = vector.load %arg3[%c32_92, %c0_93] : memref<64x48xbf16, #tpu.memory_space<vmem>>, vector<16x48xbf16>
    %cst_94 = arith.constant dense<0.000000e+00> : vector<30x48xf32>
    %96 = tpu.matmul %94, %95, %cst_94 {dimension_numbers = #tpu.dot_dimension_numbers<[1], [0], [0], [1], [0, 0, 1, 1], [], []>} : vector<30x16xbf16>, vector<16x48xbf16>, vector<30x48xf32> -> vector<30x48xf32>
    %97 = arith.addf %92, %96 : vector<30x48xf32>
    %c0_95 = arith.constant 0 : index
    %c2_96 = arith.constant 2 : index
    %c7_97 = arith.constant 7 : index
    %c0_98 = arith.constant 0 : index
    %98 = vector.load %arg1[%c0_95, %c2_96, %c7_97, %c0_98] : memref<1x4x40x16xbf16, #tpu.memory_space<vmem>>, vector<1x1x30x16xbf16>
    %99 = vector.shape_cast %98 : vector<1x1x30x16xbf16> to vector<30x16xbf16>
    %c48_99 = arith.constant 48 : index
    %c0_100 = arith.constant 0 : index
    %100 = vector.load %arg3[%c48_99, %c0_100] : memref<64x48xbf16, #tpu.memory_space<vmem>>, vector<16x48xbf16>
    %cst_101 = arith.constant dense<0.000000e+00> : vector<30x48xf32>
    %101 = tpu.matmul %99, %100, %cst_101 {dimension_numbers = #tpu.dot_dimension_numbers<[1], [0], [0], [1], [0, 0, 1, 1], [], []>} : vector<30x16xbf16>, vector<16x48xbf16>, vector<30x48xf32> -> vector<30x48xf32>
    %102 = arith.addf %97, %101 : vector<30x48xf32>
    %c0_102 = arith.constant 0 : index
    %c0_103 = arith.constant 0 : index
    %103 = vector.load %arg4[%c0_102, %c0_103] : memref<1x48xf32, #tpu.memory_space<vmem>>, vector<1x48xf32>
    %104 = vector.broadcast %103 : vector<1x48xf32> to vector<30x48xf32>
    %105 = arith.addf %102, %104 : vector<30x48xf32>
    %cst_104 = arith.constant 5.000000e-01 : f32
    %106 = vector.broadcast %cst_104 : f32 to vector<30x48xf32>
    %107 = arith.mulf %106, %105 : vector<30x48xf32>
    %cst_105 = arith.constant 0.707106769 : f32
    %108 = vector.broadcast %cst_105 : f32 to vector<30x48xf32>
    %109 = arith.mulf %105, %108 : vector<30x48xf32>
    %110 = math.erf %109 : vector<30x48xf32>
    %cst_106 = arith.constant 1.000000e+00 : f32
    %111 = vector.broadcast %cst_106 : f32 to vector<30x48xf32>
    %112 = arith.addf %111, %110 : vector<30x48xf32>
    %113 = arith.mulf %107, %112 : vector<30x48xf32>
    %c2_107 = arith.constant 2 : index
    %c0_108 = arith.constant 0 : index
    %c0_109 = arith.constant 0 : index
    %114 = vector.load %arg2[%c2_107, %c0_108, %c0_109] : memref<4x32x1xf32, #tpu.memory_space<vmem>>, vector<1x30x1xf32>
    %115 = vector.shape_cast %114 : vector<1x30x1xf32> to vector<30x1xf32>
    %116 = vector.broadcast %115 : vector<30x1xf32> to vector<30x48xf32>
    %117 = arith.mulf %113, %116 : vector<30x48xf32>
    %118 = arith.truncf %117 : vector<30x48xf32> to vector<30x48xbf16>
    %c2_110 = arith.constant 2 : index
    %c0_111 = arith.constant 0 : index
    %c0_112 = arith.constant 0 : index
    %119 = vector.load %arg8[%c2_110, %c0_111, %c0_112] : memref<4x32x48xbf16, #tpu.memory_space<vmem>>, vector<1x30x48xbf16>
    %120 = vector.shape_cast %119 : vector<1x30x48xbf16> to vector<30x48xbf16>
    %121 = vector.shape_cast %118 : vector<30x48xbf16> to vector<1x30x48xbf16>
    tpu.vector_store %arg8[%c2_110, %c0_111, %c0_112], %121 {strides = array<i32>} : memref<4x32x48xbf16, #tpu.memory_space<vmem>>, vector<1x30x48xbf16>,
    %cst_113 = arith.constant 0.000000e+00 : f32
    %122 = vector.broadcast %cst_113 : f32 to vector<30x48xf32>
    %c0_114 = arith.constant 0 : index
    %c0_115 = arith.constant 0 : index
    %c7_116 = arith.constant 7 : index
    %c0_117 = arith.constant 0 : index
    %123 = vector.load %arg1[%c0_114, %c0_115, %c7_116, %c0_117] : memref<1x4x40x16xbf16, #tpu.memory_space<vmem>>, vector<1x1x30x16xbf16>
    %124 = vector.shape_cast %123 : vector<1x1x30x16xbf16> to vector<30x16xbf16>
    %c0_118 = arith.constant 0 : index
    %c0_119 = arith.constant 0 : index
    %125 = vector.load %arg3[%c0_118, %c0_119] : memref<64x48xbf16, #tpu.memory_space<vmem>>, vector<16x48xbf16>
    %cst_120 = arith.constant dense<0.000000e+00> : vector<30x48xf32>
    %126 = tpu.matmul %124, %125, %cst_120 {dimension_numbers = #tpu.dot_dimension_numbers<[1], [0], [0], [1], [0, 0, 1, 1], [], []>} : vector<30x16xbf16>, vector<16x48xbf16>, vector<30x48xf32> -> vector<30x48xf32>
    %127 = arith.addf %122, %126 : vector<30x48xf32>
    %c0_121 = arith.constant 0 : index
    %c1_122 = arith.constant 1 : index
    %c7_123 = arith.constant 7 : index
    %c0_124 = arith.constant 0 : index
    %128 = vector.load %arg1[%c0_121, %c1_122, %c7_123, %c0_124] : memref<1x4x40x16xbf16, #tpu.memory_space<vmem>>, vector<1x1x30x16xbf16>
    %129 = vector.shape_cast %128 : vector<1x1x30x16xbf16> to vector<30x16xbf16>
    %c16_125 = arith.constant 16 : index
    %c0_126 = arith.constant 0 : index
    %130 = vector.load %arg3[%c16_125, %c0_126] : memref<64x48xbf16, #tpu.memory_space<vmem>>, vector<16x48xbf16>
    %cst_127 = arith.constant dense<0.000000e+00> : vector<30x48xf32>
    %131 = tpu.matmul %129, %130, %cst_127 {dimension_numbers = #tpu.dot_dimension_numbers<[1], [0], [0], [1], [0, 0, 1, 1], [], []>} : vector<30x16xbf16>, vector<16x48xbf16>, vector<30x48xf32> -> vector<30x48xf32>
    %132 = arith.addf %127, %131 : vector<30x48xf32>
    %c0_128 = arith.constant 0 : index
    %c2_129 = arith.constant 2 : index
    %c7_130 = arith.constant 7 : index
    %c0_131 = arith.constant 0 : index
    %133 = vector.load %arg1[%c0_128, %c2_129, %c7_130, %c0_131] : memref<1x4x40x16xbf16, #tpu.memory_space<vmem>>, vector<1x1x30x16xbf16>
    %134 = vector.shape_cast %133 : vector<1x1x30x16xbf16> to vector<30x16xbf16>
    %c32_132 = arith.constant 32 : index
    %c0_133 = arith.constant 0 : index
    %135 = vector.load %arg3[%c32_132, %c0_133] : memref<64x48xbf16, #tpu.memory_space<vmem>>, vector<16x48xbf16>
    %cst_134 = arith.constant dense<0.000000e+00> : vector<30x48xf32>
    %136 = tpu.matmul %134, %135, %cst_134 {dimension_numbers = #tpu.dot_dimension_numbers<[1], [0], [0], [1], [0, 0, 1, 1], [], []>} : vector<30x16xbf16>, vector<16x48xbf16>, vector<30x48xf32> -> vector<30x48xf32>
    %137 = arith.addf %132, %136 : vector<30x48xf32>
    %c0_135 = arith.constant 0 : index
    %c3_136 = arith.constant 3 : index
    %c7_137 = arith.constant 7 : index
    %c0_138 = arith.constant 0 : index
    %138 = vector.load %arg1[%c0_135, %c3_136, %c7_137, %c0_138] : memref<1x4x40x16xbf16, #tpu.memory_space<vmem>>, vector<1x1x30x16xbf16>
    %139 = vector.shape_cast %138 : vector<1x1x30x16xbf16> to vector<30x16xbf16>
    %c48_139 = arith.constant 48 : index
    %c0_140 = arith.constant 0 : index
    %140 = vector.load %arg3[%c48_139, %c0_140] : memref<64x48xbf16, #tpu.memory_space<vmem>>, vector<16x48xbf16>
    %cst_141 = arith.constant dense<0.000000e+00> : vector<30x48xf32>
    %141 = tpu.matmul %139, %140, %cst_141 {dimension_numbers = #tpu.dot_dimension_numbers<[1], [0], [0], [1], [0, 0, 1, 1], [], []>} : vector<30x16xbf16>, vector<16x48xbf16>, vector<30x48xf32> -> vector<30x48xf32>
    %142 = arith.addf %137, %141 : vector<30x48xf32>
    %c0_142 = arith.constant 0 : index
    %c0_143 = arith.constant 0 : index
    %143 = vector.load %arg4[%c0_142, %c0_143] : memref<1x48xf32, #tpu.memory_space<vmem>>, vector<1x48xf32>
    %144 = vector.broadcast %143 : vector<1x48xf32> to vector<30x48xf32>
    %145 = arith.addf %142, %144 : vector<30x48xf32>
    %cst_144 = arith.constant 5.000000e-01 : f32
    %146 = vector.broadcast %cst_144 : f32 to vector<30x48xf32>
    %147 = arith.mulf %146, %145 : vector<30x48xf32>
    %cst_145 = arith.constant 0.707106769 : f32
    %148 = vector.broadcast %cst_145 : f32 to vector<30x48xf32>
    %149 = arith.mulf %145, %148 : vector<30x48xf32>
    %150 = math.erf %149 : vector<30x48xf32>
    %cst_146 = arith.constant 1.000000e+00 : f32
    %151 = vector.broadcast %cst_146 : f32 to vector<30x48xf32>
    %152 = arith.addf %151, %150 : vector<30x48xf32>
    %153 = arith.mulf %147, %152 : vector<30x48xf32>
    %c3_147 = arith.constant 3 : index
    %c0_148 = arith.constant 0 : index
    %c0_149 = arith.constant 0 : index
    %154 = vector.load %arg2[%c3_147, %c0_148, %c0_149] : memref<4x32x1xf32, #tpu.memory_space<vmem>>, vector<1x30x1xf32>
    %155 = vector.shape_cast %154 : vector<1x30x1xf32> to vector<30x1xf32>
    %156 = vector.broadcast %155 : vector<30x1xf32> to vector<30x48xf32>
    %157 = arith.mulf %153, %156 : vector<30x48xf32>
    %158 = arith.truncf %157 : vector<30x48xf32> to vector<30x48xbf16>
    %c3_150 = arith.constant 3 : index
    %c0_151 = arith.constant 0 : index
    %c0_152 = arith.constant 0 : index
    %159 = vector.load %arg8[%c3_150, %c0_151, %c0_152] : memref<4x32x48xbf16, #tpu.memory_space<vmem>>, vector<1x30x48xbf16>
    %160 = vector.shape_cast %159 : vector<1x30x48xbf16> to vector<30x48xbf16>
    %161 = vector.shape_cast %158 : vector<30x48xbf16> to vector<1x30x48xbf16>
    tpu.vector_store %arg8[%c3_150, %c0_151, %c0_152], %161 {strides = array<i32>} : memref<4x32x48xbf16, #tpu.memory_space<vmem>>, vector<1x30x48xbf16>,
    %cst_153 = arith.constant 0.000000e+00 : f32
    %162 = vector.broadcast %cst_153 : f32 to vector<24x96xf32>
    %c0_154 = arith.constant 0 : index
    %c0_155 = arith.constant 0 : index
    %c0_156 = arith.constant 0 : index
    %163 = vector.load %arg8[%c0_154, %c0_155, %c0_156] : memref<4x32x48xbf16, #tpu.memory_space<vmem>>, vector<1x24x48xbf16>
    %164 = vector.shape_cast %163 : vector<1x24x48xbf16> to vector<24x48xbf16>
    %c0_157 = arith.constant 0 : index
    %c0_158 = arith.constant 0 : index
    %165 = vector.load %arg5[%c0_157, %c0_158] : memref<432x96xbf16, #tpu.memory_space<vmem>>, vector<48x96xbf16>
    %cst_159 = arith.constant dense<0.000000e+00> : vector<24x96xf32>
    %166 = tpu.matmul %164, %165, %cst_159 {dimension_numbers = #tpu.dot_dimension_numbers<[1], [0], [0], [1], [0, 0, 1, 1], [], []>} : vector<24x48xbf16>, vector<48x96xbf16>, vector<24x96xf32> -> vector<24x96xf32>
    %167 = arith.addf %162, %166 : vector<24x96xf32>
    %c1_160 = arith.constant 1 : index
    %c0_161 = arith.constant 0 : index
    %c0_162 = arith.constant 0 : index
    %168 = vector.load %arg8[%c1_160, %c0_161, %c0_162] : memref<4x32x48xbf16, #tpu.memory_space<vmem>>, vector<1x24x48xbf16>
    %169 = vector.shape_cast %168 : vector<1x24x48xbf16> to vector<24x48xbf16>
    %c48_163 = arith.constant 48 : index
    %c0_164 = arith.constant 0 : index
    %170 = vector.load %arg5[%c48_163, %c0_164] : memref<432x96xbf16, #tpu.memory_space<vmem>>, vector<48x96xbf16>
    %cst_165 = arith.constant dense<0.000000e+00> : vector<24x96xf32>
    %171 = tpu.matmul %169, %170, %cst_165 {dimension_numbers = #tpu.dot_dimension_numbers<[1], [0], [0], [1], [0, 0, 1, 1], [], []>} : vector<24x48xbf16>, vector<48x96xbf16>, vector<24x96xf32> -> vector<24x96xf32>
    %172 = arith.addf %167, %171 : vector<24x96xf32>
    %c0_166 = arith.constant 0 : index
    %c1_167 = arith.constant 1 : index
    %c0_168 = arith.constant 0 : index
    %173 = vector.load %arg8[%c0_166, %c1_167, %c0_168] : memref<4x32x48xbf16, #tpu.memory_space<vmem>>, vector<1x24x48xbf16>
    %174 = vector.shape_cast %173 : vector<1x24x48xbf16> to vector<24x48xbf16>
    %c96 = arith.constant 96 : index
    %c0_169 = arith.constant 0 : index
    %175 = vector.load %arg5[%c96, %c0_169] : memref<432x96xbf16, #tpu.memory_space<vmem>>, vector<48x96xbf16>
    %cst_170 = arith.constant dense<0.000000e+00> : vector<24x96xf32>
    %176 = tpu.matmul %174, %175, %cst_170 {dimension_numbers = #tpu.dot_dimension_numbers<[1], [0], [0], [1], [0, 0, 1, 1], [], []>} : vector<24x48xbf16>, vector<48x96xbf16>, vector<24x96xf32> -> vector<24x96xf32>
    %177 = arith.addf %172, %176 : vector<24x96xf32>
    %c2_171 = arith.constant 2 : index
    %c0_172 = arith.constant 0 : index
    %c0_173 = arith.constant 0 : index
    %178 = vector.load %arg8[%c2_171, %c0_172, %c0_173] : memref<4x32x48xbf16, #tpu.memory_space<vmem>>, vector<1x24x48xbf16>
    %179 = vector.shape_cast %178 : vector<1x24x48xbf16> to vector<24x48xbf16>
    %c144 = arith.constant 144 : index
    %c0_174 = arith.constant 0 : index
    %180 = vector.load %arg5[%c144, %c0_174] : memref<432x96xbf16, #tpu.memory_space<vmem>>, vector<48x96xbf16>
    %cst_175 = arith.constant dense<0.000000e+00> : vector<24x96xf32>
    %181 = tpu.matmul %179, %180, %cst_175 {dimension_numbers = #tpu.dot_dimension_numbers<[1], [0], [0], [1], [0, 0, 1, 1], [], []>} : vector<24x48xbf16>, vector<48x96xbf16>, vector<24x96xf32> -> vector<24x96xf32>
    %182 = arith.addf %177, %181 : vector<24x96xf32>
    %c3_176 = arith.constant 3 : index
    %c0_177 = arith.constant 0 : index
    %c0_178 = arith.constant 0 : index
    %183 = vector.load %arg8[%c3_176, %c0_177, %c0_178] : memref<4x32x48xbf16, #tpu.memory_space<vmem>>, vector<1x24x48xbf16>
    %184 = vector.shape_cast %183 : vector<1x24x48xbf16> to vector<24x48xbf16>
    %c192 = arith.constant 192 : index
    %c0_179 = arith.constant 0 : index
    %185 = vector.load %arg5[%c192, %c0_179] : memref<432x96xbf16, #tpu.memory_space<vmem>>, vector<48x96xbf16>
    %cst_180 = arith.constant dense<0.000000e+00> : vector<24x96xf32>
    %186 = tpu.matmul %184, %185, %cst_180 {dimension_numbers = #tpu.dot_dimension_numbers<[1], [0], [0], [1], [0, 0, 1, 1], [], []>} : vector<24x48xbf16>, vector<48x96xbf16>, vector<24x96xf32> -> vector<24x96xf32>
    %187 = arith.addf %182, %186 : vector<24x96xf32>
    %c2_181 = arith.constant 2 : index
    %c1_182 = arith.constant 1 : index
    %c0_183 = arith.constant 0 : index
    %188 = vector.load %arg8[%c2_181, %c1_182, %c0_183] : memref<4x32x48xbf16, #tpu.memory_space<vmem>>, vector<1x24x48xbf16>
    %189 = vector.shape_cast %188 : vector<1x24x48xbf16> to vector<24x48xbf16>
    %c240 = arith.constant 240 : index
    %c0_184 = arith.constant 0 : index
    %190 = vector.load %arg5[%c240, %c0_184] : memref<432x96xbf16, #tpu.memory_space<vmem>>, vector<48x96xbf16>
    %cst_185 = arith.constant dense<0.000000e+00> : vector<24x96xf32>
    %191 = tpu.matmul %189, %190, %cst_185 {dimension_numbers = #tpu.dot_dimension_numbers<[1], [0], [0], [1], [0, 0, 1, 1], [], []>} : vector<24x48xbf16>, vector<48x96xbf16>, vector<24x96xf32> -> vector<24x96xf32>
    %192 = arith.addf %187, %191 : vector<24x96xf32>
    %c0_186 = arith.constant 0 : index
    %c6_187 = arith.constant 6 : index
    %c0_188 = arith.constant 0 : index
    %193 = vector.load %arg8[%c0_186, %c6_187, %c0_188] : memref<4x32x48xbf16, #tpu.memory_space<vmem>>, vector<1x24x48xbf16>
    %194 = vector.shape_cast %193 : vector<1x24x48xbf16> to vector<24x48xbf16>
    %c288 = arith.constant 288 : index
    %c0_189 = arith.constant 0 : index
    %195 = vector.load %arg5[%c288, %c0_189] : memref<432x96xbf16, #tpu.memory_space<vmem>>, vector<48x96xbf16>
    %cst_190 = arith.constant dense<0.000000e+00> : vector<24x96xf32>
    %196 = tpu.matmul %194, %195, %cst_190 {dimension_numbers = #tpu.dot_dimension_numbers<[1], [0], [0], [1], [0, 0, 1, 1], [], []>} : vector<24x48xbf16>, vector<48x96xbf16>, vector<24x96xf32> -> vector<24x96xf32>
    %197 = arith.addf %192, %196 : vector<24x96xf32>
    %c1_191 = arith.constant 1 : index
    %c6_192 = arith.constant 6 : index
    %c0_193 = arith.constant 0 : index
    %198 = vector.load %arg8[%c1_191, %c6_192, %c0_193] : memref<4x32x48xbf16, #tpu.memory_space<vmem>>, vector<1x24x48xbf16>
    %199 = vector.shape_cast %198 : vector<1x24x48xbf16> to vector<24x48xbf16>
    %c336 = arith.constant 336 : index
    %c0_194 = arith.constant 0 : index
    %200 = vector.load %arg5[%c336, %c0_194] : memref<432x96xbf16, #tpu.memory_space<vmem>>, vector<48x96xbf16>
    %cst_195 = arith.constant dense<0.000000e+00> : vector<24x96xf32>
    %201 = tpu.matmul %199, %200, %cst_195 {dimension_numbers = #tpu.dot_dimension_numbers<[1], [0], [0], [1], [0, 0, 1, 1], [], []>} : vector<24x48xbf16>, vector<48x96xbf16>, vector<24x96xf32> -> vector<24x96xf32>
    %202 = arith.addf %197, %201 : vector<24x96xf32>
    %c0_196 = arith.constant 0 : index
    %c7_197 = arith.constant 7 : index
    %c0_198 = arith.constant 0 : index
    %203 = vector.load %arg8[%c0_196, %c7_197, %c0_198] : memref<4x32x48xbf16, #tpu.memory_space<vmem>>, vector<1x24x48xbf16>
    %204 = vector.shape_cast %203 : vector<1x24x48xbf16> to vector<24x48xbf16>
    %c384 = arith.constant 384 : index
    %c0_199 = arith.constant 0 : index
    %205 = vector.load %arg5[%c384, %c0_199] : memref<432x96xbf16, #tpu.memory_space<vmem>>, vector<48x96xbf16>
    %cst_200 = arith.constant dense<0.000000e+00> : vector<24x96xf32>
    %206 = tpu.matmul %204, %205, %cst_200 {dimension_numbers = #tpu.dot_dimension_numbers<[1], [0], [0], [1], [0, 0, 1, 1], [], []>} : vector<24x48xbf16>, vector<48x96xbf16>, vector<24x96xf32> -> vector<24x96xf32>
    %207 = arith.addf %202, %206 : vector<24x96xf32>
    %c0_201 = arith.constant 0 : index
    %c0_202 = arith.constant 0 : index
    %208 = vector.load %arg6[%c0_201, %c0_202] : memref<1x96xf32, #tpu.memory_space<vmem>>, vector<1x96xf32>
    %209 = vector.broadcast %208 : vector<1x96xf32> to vector<24x96xf32>
    %210 = arith.addf %207, %209 : vector<24x96xf32>
    %211 = vector.extract_strided_slice %210 {offsets = [0, 0], sizes = [4, 96], strides = [1, 1]} : vector<24x96xf32> to vector<4x96xf32>
    %c0_203 = arith.constant 0 : index
    %c0_204 = arith.constant 0 : index
    %c0_205 = arith.constant 0 : index
    %c0_206 = arith.constant 0 : index
    %212 = vector.load %arg7[%c0_203, %c0_204, %c0_205, %c0_206] : memref<1x4x4x96xf32, #tpu.memory_space<vmem>>, vector<1x1x4x96xf32>
    %213 = vector.shape_cast %212 : vector<1x1x4x96xf32> to vector<4x96xf32>
    %214 = vector.shape_cast %211 : vector<4x96xf32> to vector<1x1x4x96xf32>
    tpu.vector_store %arg7[%c0_203, %c0_204, %c0_205, %c0_206], %214 {strides = array<i32>} : memref<1x4x4x96xf32, #tpu.memory_space<vmem>>, vector<1x1x4x96xf32>,
    %215 = vector.extract_strided_slice %210 {offsets = [6, 0], sizes = [4, 96], strides = [1, 1]} : vector<24x96xf32> to vector<4x96xf32>
    %c0_207 = arith.constant 0 : index
    %c1_208 = arith.constant 1 : index
    %c0_209 = arith.constant 0 : index
    %c0_210 = arith.constant 0 : index
    %216 = vector.load %arg7[%c0_207, %c1_208, %c0_209, %c0_210] : memref<1x4x4x96xf32, #tpu.memory_space<vmem>>, vector<1x1x4x96xf32>
    %217 = vector.shape_cast %216 : vector<1x1x4x96xf32> to vector<4x96xf32>
    %218 = vector.shape_cast %215 : vector<4x96xf32> to vector<1x1x4x96xf32>
    tpu.vector_store %arg7[%c0_207, %c1_208, %c0_209, %c0_210], %218 {strides = array<i32>} : memref<1x4x4x96xf32, #tpu.memory_space<vmem>>, vector<1x1x4x96xf32>,
    %219 = vector.extract_strided_slice %210 {offsets = [12, 0], sizes = [4, 96], strides = [1, 1]} : vector<24x96xf32> to vector<4x96xf32>
    %c0_211 = arith.constant 0 : index
    %c2_212 = arith.constant 2 : index
    %c0_213 = arith.constant 0 : index
    %c0_214 = arith.constant 0 : index
    %220 = vector.load %arg7[%c0_211, %c2_212, %c0_213, %c0_214] : memref<1x4x4x96xf32, #tpu.memory_space<vmem>>, vector<1x1x4x96xf32>
    %221 = vector.shape_cast %220 : vector<1x1x4x96xf32> to vector<4x96xf32>
    %222 = vector.shape_cast %219 : vector<4x96xf32> to vector<1x1x4x96xf32>
    tpu.vector_store %arg7[%c0_211, %c2_212, %c0_213, %c0_214], %222 {strides = array<i32>} : memref<1x4x4x96xf32, #tpu.memory_space<vmem>>, vector<1x1x4x96xf32>,
    %223 = vector.extract_strided_slice %210 {offsets = [18, 0], sizes = [4, 96], strides = [1, 1]} : vector<24x96xf32> to vector<4x96xf32>
    %c0_215 = arith.constant 0 : index
    %c3_216 = arith.constant 3 : index
    %c0_217 = arith.constant 0 : index
    %c0_218 = arith.constant 0 : index
    %224 = vector.load %arg7[%c0_215, %c3_216, %c0_217, %c0_218] : memref<1x4x4x96xf32, #tpu.memory_space<vmem>>, vector<1x1x4x96xf32>
    %225 = vector.shape_cast %224 : vector<1x1x4x96xf32> to vector<4x96xf32>
    %226 = vector.shape_cast %223 : vector<4x96xf32> to vector<1x1x4x96xf32>
    tpu.vector_store %arg7[%c0_215, %c3_216, %c0_217, %c0_218], %226 {strides = array<i32>} : memref<1x4x4x96xf32, #tpu.memory_space<vmem>>, vector<1x1x4x96xf32>,
    return
  }
  func.func @transform_0(%arg0: i32) -> (i32, i32, i32, i32) {
    %c0_i32 = arith.constant 0 : i32
    %c0_i32_0 = arith.constant 0 : i32
    %c0_i32_1 = arith.constant 0 : i32
    %c0_i32_2 = arith.constant 0 : i32
    return %arg0, %c0_i32, %c0_i32_0, %c0_i32_1 : i32, i32, i32, i32
  }
  func.func @transform_1(%arg0: i32) -> (i32, i32, i32) {
    %c0_i32 = arith.constant 0 : i32
    %c0_i32_0 = arith.constant 0 : i32
    %c0_i32_1 = arith.constant 0 : i32
    %c0_i32_2 = arith.constant 0 : i32
    return %c0_i32, %c0_i32_0, %c0_i32_1 : i32, i32, i32
  }
  func.func @transform_2(%arg0: i32) -> (i32, i32) {
    %c0_i32 = arith.constant 0 : i32
    %c0_i32_0 = arith.constant 0 : i32
    %c0_i32_1 = arith.constant 0 : i32
    return %c0_i32, %c0_i32_0 : i32, i32
  }
  func.func @transform_3(%arg0: i32) -> (i32, i32) {
    %c0_i32 = arith.constant 0 : i32
    %c0_i32_0 = arith.constant 0 : i32
    %c0_i32_1 = arith.constant 0 : i32
    return %c0_i32, %c0_i32_0 : i32, i32
  }
  func.func @transform_4(%arg0: i32) -> (i32, i32) {
    %c0_i32 = arith.constant 0 : i32
    %c0_i32_0 = arith.constant 0 : i32
    %c0_i32_1 = arith.constant 0 : i32
    return %c0_i32, %c0_i32_0 : i32, i32
  }
  func.func @transform_5(%arg0: i32) -> (i32, i32) {
    %c0_i32 = arith.constant 0 : i32
    %c0_i32_0 = arith.constant 0 : i32
    %c0_i32_1 = arith.constant 0 : i32
    return %c0_i32, %c0_i32_0 : i32, i32
  }
  func.func @transform_6(%arg0: i32) -> (i32, i32, i32, i32) {
    %c0_i32 = arith.constant 0 : i32
    %c0_i32_0 = arith.constant 0 : i32
    %c0_i32_1 = arith.constant 0 : i32
    %c0_i32_2 = arith.constant 0 : i32
    return %arg0, %c0_i32, %c0_i32_0, %c0_i32_1 : i32, i32, i32, i32
  }
}

</mosaic_0001>

<bundles_post_ra>
// kernel: stem_layer_forward.1
= control target key start
LH: loop header
LB: loop body
LE: loop exit
PB: predicated region body
PF: predicated region fallthrough
CT: control target
= control target key end

     0   :  { %11 = vsyncpa [#allocation4], 0  ;;  %s4338_s0 = inlined_call_operand.vmem [shape: bf16[2,4,40,16], index: 0, kind: input, shape index: {}]   ;;  %s4339_s1 = inlined_call_operand.vmem [shape: f32[4,32,1], index: 1, kind: input, shape index: {}]   ;;  %s4340_s2 = inlined_call_operand.vmem [shape: bf16[64,48], index: 2, kind: input, shape index: {}]   ;;  %s4341_s3 = inlined_call_operand.vmem [shape: f32[1,48], index: 3, kind: input, shape index: {}]   ;;  %s4342_s4 = inlined_call_operand.vmem [shape: bf16[432,96], index: 4, kind: input, shape index: {}]   ;;  %s4343_s5 = inlined_call_operand.vmem [shape: f32[1,96], index: 5, kind: input, shape index: {}]   ;;  %s4344_s6 = inlined_call_operand.hbm [shape: f32[2,4,4,96], index: 6, kind: output, shape index: {}]  }
   0x1   :  { %13 = vsyncpa [#allocation4 + $0x1], 0  ;;  %s3841_s21 = smov 0   ;;  %s3843_s22 = smov 0  }
   0x2   :  { %s3845_s23 = smov 0   ;;  %s3847_s24 = smov 0  }
   0x3 LB: > { %s3862_s25 = sadd.s32 4294967295, %s3800_s24   ;;  %s3021_s26 = sadd.s32 4294967294, %s3800_s24   ;;  %s3800_s24 = sphi %s3847_s24, %s4350_s24   ;;  %s3796_s23 = sphi %s3845_s23, %s4349_s23   ;;  %s3792_s22 = sphi %s3843_s22, %s4348_s22   ;;  %s3788_s21 = sphi %s3841_s21, %s4347_s21  }
   0x4   : > { %s3866_s27 = sadd.s32 1, %s3800_s24   ;;  %s157_s28 = sadd.s32 1, %s3796_s23 }
   0x5   : > { %s154_s29 = ssub.s32 %s3800_s24, %s3866_s27  ;;  %p167_p0 = scmp.ne.s32.totalorder %s3796_s23, %s3792_s22 }
   0x6   : > { %p155_p1 = scmp.eq.s32.totalorder %s154_s29, 0  ;;  %p168_p2 = scmp.eq.s32.totalorder %s3862_s25, 1 }
   0x7   : > { %p173_p3 = scmp.ne.s32.totalorder %s3792_s22, %s3788_s21  ;;  %p174_p4 = scmp.eq.s32.totalorder %s3021_s26, 1 }
   0x8   : > { %s3877_s30 = scalar_select %p155_p1, %s3796_s23, %s157_s28  }
   0x9   : > { %p3879_p5 = por %p168_p2, %p167_p0  ;;  %p3883_p6 = por %p174_p4, %p173_p3 }
   0xa   : > { %p3024_p7 = scmp.ge.s32.totalorder %s3800_s24, 1  ;;  %p215_p8 = scmp.lt.s32.totalorder %s3800_s24, 3 }
   0xc   : > { %p216_p9 = pnand %p3024_p7, %p215_p8 }
   0xd   : > { %v3619_v0 = vld [vmem:[%s4340_s2] sm:$0xff] (!%p216_p9)   ;;  %p245_p10 = scmp.lt.s32.totalorder (!%p216_p9), %s3862_s25, 1  ;;  %v3622_v1 = vld [vmem:[%s4340_s2 + $0x8] sm:$0xff] (!%p216_p9)   ;;  %v3626_v3 = vld [vmem:[%s4340_s2 + $0x10] sm:$0xff] (!%p216_p9)   ;;  %vm302_vm0 = vcmask (!%p216_p9), 130048   ;;  %v3802_v7 = vmov (!%p216_p9), 0  }
   0xe   : > { %219 = sbr.rel (%p216_p9) target bundleno = 630 (0x276), region = 44  ;;  %3346 = vmatprep.subr.bf16.mxu0 (!%p216_p9), %v3619_v0  ;;  %v3625_v2 = vld [vmem:[%s4340_s2 + $0x8] sm:$0xff] (!%p216_p9)   ;;  %3340 = vmatprep.subr.bf16.mxu1 (!%p216_p9), %v3622_v1  ;;  %v3911_v4 = vld [vmem:[%s4340_s2 + $0x18] sm:$0xff] (!%p216_p9)   ;;  %vm280_vm1 = vsmask.f32 (!%p216_p9), 7424  ;;  %vm251_vm2 = vcmask (!%p216_p9), 392199  }
   0xf   : > { %3347 = vmatpush3.bf16.msra.mxu0 (!%p216_p9), %v3619_v0  ;;  %3341 = vmatpush3.bf16.msra.mxu1 (!%p216_p9), %v3622_v1  ;;  %252 = vst.msk [vmem:[#allocation2 + $0x8] sm:$0x80] (!%p216_p9), %vm251_vm2, %v3802_v7  ;;  %vm450_vm3 = vcmask (!%p216_p9), 1044480   ;;  %v3632_v26 = vld [vmem:[%s4340_s2] sm:$0xff] (!%p216_p9)   ;;  %vm541_vm4 = vsmask.f32 (!%p216_p9), 4352 }
  0x10   : > { %3364 = vmatprep.subr.bf16.mxu1 (!%p216_p9), %v3625_v2  ;;  %3352 = vmatprep.subr.bf16.mxu0 (!%p216_p9), %v3626_v3  ;;  %v3640_v53 = vld [vmem:[%s4340_s2 + $0x8] sm:$0xff] (!%p216_p9)   ;;  %v3951_v58 = vld [vmem:[%s4340_s2 + $0x10] sm:$0xff] (!%p216_p9)   ;;  %vm696_vm5 = vcmask (!%p216_p9), 391168   ;;  %vm694_vm6 = vcmask (!%p216_p9), 392192   ;;  %s242_s15 = sand.u32 (!%p216_p9), 1, %s3792_s22   ;;  %vm2943_vm7 = vcmask (!%p216_p9), 783362  }
  0x11   : > { %3617 = vset.pattern.permute.xlu0 (!%p216_p9), %v3802_v7  ;;  %3618 = vset.pattern.permute.xlu1 (!%p216_p9), %v3802_v7  ;;  %s3246_s19 = sshll.u32 (!%p216_p9), %s3862_s25, 8  ;;  %vm2932_vm8 = vcmask (!%p216_p9), 781312   ;;  %vm2935_vm9 = vcmask (!%p216_p9), 785414   ;;  %vm2937_vm10 = vcmask (!%p216_p9), 779264   ;;  %vm2940_vm11 = vcmask (!%p216_p9), 785412   ;;  %s3803_s11 = smov (!%p216_p9), [#allocation3]  }
  0x12   : > { %s4293_s10 = scalar_lea.hbm (!%p216_p9), %s4344_s6, %s3246_s19  ;;  %s3742_s12 = sshll.u32 (!%p216_p9), %s3803_s11, 4  ;;  %s3743_s12 = int_to_ptr.vmem [resolvable:$false] %s3742_s12 }
  0x15   : > { %s246_s13 = scalar_select %p245_p10, %s3862_s25, 1 }
  0x16   : > { %s4297_s25 = scalar_lea.sflag [#allocation4], %s242_s15 }
  0x17   : > { %s3574_s16 = smul.u32 80, %s246_s13  ;;  %s3744_s13 = scalar_lea.vmem %s3743_s12, 512 }
  0x19   : > { %s3906_s26 = scalar_lea.vmem %s4338_s0, %s3574_s16  ;;  %s3025_s16 = sshll.u32 %s242_s15, 4 }
  0x1a   : > { %v3620_v5 = vld [vmem:[%s3906_s26 + $0x3c] sm:$0xff]   ;;  %v3621_v6 = vld [vmem:[%s3906_s26 + $0x44] sm:$0x7f]   ;;  %v3624_v9 = vld [vmem:[%s3906_s26 + $0x30] sm:$0xff]   ;;  %s244_s20 = scalar_lea.vmem [#allocation3], %s3025_s16 }
  0x1b   : > { %3348 = vmatprep.mubr.msk.bf16.mxu0 %vm302_vm0, %v3620_v5  ;;  %v3623_v8 = vld [vmem:[%s3906_s26 + $0x28] sm:$0xff]   ;;  %v289_v12 = vshll.u32 %v3624_v9, 16  ;;  %v293_v13 = vshrl.u32 %v3624_v9, 16  ;;  %v3627_v14 = vld [vmem:[%s3906_s26 + $0x14] sm:$0xf8]   ;;  %v3628_v15 = vld [vmem:[%s3906_s26 + $0x1c] sm:$0xff]  }
  0x1c   : > { %3349 = vmatmul.mubr.msk.bf16.vlgmr.msra.gmra.mrb[0].mxu0 %vm302_vm0, %v3621_v6  ;;  %v282_v10 = vshrl.u32 %v3623_v8, 16  ;;  %v284_v11 = vshll.u32 %v3623_v8, 16  ;;  %v3629_v18 = vld [vmem:[%s3906_s26 + $0x24] ss:$0 sps:$4 sm:$0x33]   ;;  %v3630_v19 = vld [vmem:[%s3906_s26 + $0x3c] sm:$0xff]  }
  0x1d   : > { %3353 = vmatpush3.bf16.msra.mxu0 %v3626_v3  ;;  %v291_v17 = vrot.slane %v289_v12, 1  ;;  %v451_v20 = vrot.slane %v3627_v14, 3  ;;  %v452_v21 = vrot.slane %v3628_v15, 3  ;;  %v454_v24 = vrot.slane %v3629_v18, 3  ;;  %v3631_v25 = vld [vmem:[%s3906_s26 + $0x44] sm:$0xff]   ;;  %v3940_v48 = vld [vmem:[%s3906_s26 + $0x30] sm:$0xff]  }
  0x1e   : > { %3358 = vmatprep.subr.bf16.mxu0 %v3911_v4  ;;  %v286_v16 = vrot.slane %v284_v11, 1  ;;  %v721_v28 = vshrl.u32 %v3630_v19, 16  ;;  %v723_v29 = vshll.u32 %v3630_v19, 16  ;;  %v728_v31 = vshll.u32 %v3631_v25, 16  ;;  %v3634_v35 = vld [vmem:[%s3906_s26] sm:$0xf8]  }
  0x1f   : > { %v295_v23 = vor.u32 %v293_v13, %v291_v17  ;;  %v453_v27 = vsel %vm450_vm3, %v451_v20, %v452_v21  ;;  %v732_v32 = vshrl.u32 %v3631_v25, 16  ;;  %v455_v33 = vsel %vm450_vm3, %v452_v21, %v454_v24  ;;  %v3635_v36 = vld [vmem:[%s3906_s26 + $0x8] sm:$0xff]   ;;  %v3636_v38 = vld [vmem:[%s3906_s26 + $0x10] ss:$0 sps:$4 sm:$0x77]   ;;  %s2959_s28 = sshll.u32 %s244_s20, 4  ;;  %s4295_s28 = int_to_ptr.vmem [resolvable:$true] %s2959_s28 }
  0x20   : > { %v287_v22 = vor.u32 %v286_v16, %v282_v10  ;;  %3354 = vmatprep.mubr.msk.bf16.mxu0 %vm302_vm0, %v453_v27  ;;  %v725_v34 = vrot.slane %v723_v29, 1  ;;  %v730_v37 = vrot.slane %v728_v31, 1  ;;  %v543_v40 = vshrl.u32 %v3634_v35, 16  ;;  %v3637_v43 = vld [vmem:[%s3906_s26 + $0x28] sm:$0xff]   ;;  %v3641_v5 = vld [vmem:[%s3906_s26] sm:$0xf8]   ;;  %p3745_p0 = scmp.lt.s32.totalorder %s4295_s28, %s3743_s12 }
  0x21   : > { %v546_v41 = vshll.u32 %v3634_v35, 16  ;;  %v551_v42 = vshrl.u32 %v3635_v36, 16  ;;  %v554_v45 = vshll.u32 %v3635_v36, 16  ;;  %v560_v46 = vshrl.u32 %v3636_v38, 16  ;;  %v3642_v63 = vld [vmem:[%s3906_s26 + $0x8] sm:$0xff]   ;;  %v3648_v27 = vld [vmem:[%s4340_s2] sm:$0xff]  }
  0x22   : > { %v292_v30 = vsel %vm280_vm1, %v287_v22, %v291_v17  ;;  %v726_v39 = vor.u32 %v725_v34, %v721_v28  ;;  %v734_v44 = vor.u32 %v732_v32, %v730_v37  ;;  %v563_v47 = vshll.u32 %v3636_v38, 16  ;;  %v3643_v9 = vld [vmem:[%s3906_s26 + $0x10] ss:$0 sps:$4 sm:$0x77]   ;;  %v3645_v10 = vld [vmem:[%s3906_s26 + $0x8] sm:$0xff]   ;;  %v3650_v32 = vld [vmem:[%s3906_s26 + $0x1c] sm:$0xff]  }
  0x23   : > { %3342 = vmatprep.mubr.msk.bf16.mxu1 %vm302_vm0, %v292_v30  ;;  %v545_v50 = vrot.slane %v543_v40, 3  ;;  %v548_v51 = vrot.slane %v546_v41, 4  ;;  %v553_v52 = vrot.slane %v551_v42, 3  ;;  %v556_v54 = vrot.slane %v554_v45, 4  ;;  %v3644_v22 = vld [vmem:[%s3906_s26] sm:$0xf8]  }
  0x24   : > { %3343 = vmatmul.mubr.msk.bf16.vlgmr.msra.gmra.mrb[0].mxu1 %vm302_vm0, %v295_v23  ;;  %v731_v49 = vsel %vm280_vm1, %v726_v39, %v730_v37  ;;  %v562_v55 = vrot.slane %v560_v46, 3  ;;  %v565_v56 = vrot.slane %v563_v47, 4  ;;  %v807_v57 = vshrl.u32 %v3637_v43, 16  ;;  %v3647_v35 = vld [vmem:[%s3906_s26 + $0x10] ss:$0 sps:$4 sm:$0x77]  }
  0x25   : > { %3365 = vmatpush3.bf16.msra.mxu1 %v3625_v2  ;;  %3366 = vmatprep.mubr.msk.bf16.mxu1 %vm302_vm0, %v731_v49  ;;  %v549_v59 = vor.u32 %v548_v51, %v545_v50  ;;  %v809_v60 = vshll.u32 %v3637_v43, 16  ;;  %v814_v61 = vshll.u32 %v3940_v48, 16  ;;  %v818_v62 = vshrl.u32 %v3940_v48, 16  ;;  %v3646_v40 = vld [vmem:[%s4340_s2 + $0x18] sm:$0xff]  }
  0x26   : > { %3370 = vmatprep.subr.bf16.mxu1 %v3632_v26  ;;  %v557_v0 = vor.u32 %v556_v54, %v553_v52  ;;  %v566_v1 = vor.u32 %v565_v56, %v562_v55  ;;  %v1205_v6 = vshrl.u32 %v3642_v63, 16  ;;  %v1208_v7 = vshll.u32 %v3642_v63, 16  ;;  %v3649_v45 = vld [vmem:[%s3906_s26 + $0x14] sm:$0xf8]   ;;  %v3653_v50 = vld [vmem:[%s3906_s26 + $0x1c] sm:$0xff]  }
  0x27   : > { %v811_v2 = vrot.slane %v809_v60, 1  ;;  %v816_v3 = vrot.slane %v814_v61, 1  ;;  %v1197_v11 = vshrl.u32 %v3641_v5, 16  ;;  %v1200_v12 = vshll.u32 %v3641_v5, 16  ;;  %v3652_v56 = vld [vmem:[%s3906_s26 + $0x14] sm:$0xf8]  }
  0x28   : > { %3355 = vmatmul.mubr.msk.bf16.vlgmr.msra.gmra.mrb[0].mxu0 %vm302_vm0, %v455_v33  ;;  %v1207_v13 = vrot.slane %v1205_v6, 3  ;;  %v1210_v14 = vrot.slane %v1208_v7, 4  ;;  %v567_v15 = vsel %vm541_vm4, %v557_v0, %v566_v1  ;;  %v1214_v17 = vshrl.u32 %v3643_v9, 16  ;;  %v3656_v1 = vld [vmem:[%s4340_s2 + $0x10] sm:$0xff]  }
  0x29   : > { %3359 = vmatpush3.bf16.msra.mxu0 %v3911_v4  ;;  %v558_v4 = vsel %vm541_vm4, %v549_v59, %v557_v0  ;;  %v812_v8 = vor.u32 %v811_v2, %v807_v57  ;;  %v1217_v18 = vshll.u32 %v3643_v9, 16  ;;  %v1199_v19 = vrot.slane %v1197_v11, 3  ;;  %v3658_v9 = vld [vmem:[%s3906_s26 + $0x44] sm:$0xff]  }
  0x2a   : > { %3388 = vmatprep.subr.bf16.mxu0 %v3640_v53  ;;  %3360 = vmatprep.mubr.msk.bf16.mxu0 %vm302_vm0, %v558_v4  ;;  %v1202_v20 = vrot.slane %v1200_v12, 4  ;;  %v1211_v21 = vor.u32 %v1210_v14, %v1207_v13  ;;  %v911_v23 = vshrl.u32 %v3645_v10, 16  ;;  %v1216_v24 = vrot.slane %v1214_v17, 3  ;;  %v4001_v12 = vld [vmem:[%s4340_s2 + $0x8] sm:$0xff]  }
  0x2b   : > { %v817_v16 = vsel %vm280_vm1, %v812_v8, %v816_v3  ;;  %v1219_v25 = vrot.slane %v1217_v18, 4  ;;  %v903_v29 = vshrl.u32 %v3644_v22, 16  ;;  %v906_v30 = vshll.u32 %v3644_v22, 16  ;;  %v3657_v8 = vld [vmem:[%s3906_s26 + $0x3c] sm:$0xf8]  }
  0x2c   : > { %3367 = vmatmul.mubr.msk.bf16.vlgmr.msra.gmra.mrb[4].mxu1 %vm302_vm0, %v734_v44  ;;  %v1203_v28 = vor.u32 %v1202_v20, %v1199_v19  ;;  %v913_v31 = vrot.slane %v911_v23, 3  ;;  %v820_v36 = vor.u32 %v818_v62, %v816_v3  ;;  %v920_v42 = vshrl.u32 %v3647_v35, 16  ;;  %v3655_v62 = vld [vmem:[%s3906_s26 + $0x24] ss:$0 sps:$4 sm:$0x77]  }
  0x2d   : > { %3371 = vmatpush3.bf16.msra.mxu1 %v3632_v26  ;;  %3372 = vmatprep.mubr.msk.bf16.mxu1 %vm302_vm0, %v817_v16  ;;  %v914_v26 = vshll.u32 %v3645_v10, 16  ;;  %v1220_v33 = vor.u32 %v1219_v25, %v1216_v24  ;;  %v905_v38 = vrot.slane %v903_v29, 3  ;;  %v908_v39 = vrot.slane %v906_v30, 4  ;;  %v3661_v10 = vld [vmem:[%s3906_s26 + $0x1c] sm:$0xff]   ;;  %v3660_v22 = vld [vmem:[%s3906_s26 + $0x14] sm:$0xf8]  }
  0x2e   : > { %3376 = vmatprep.subr.bf16.mxu1 %v3951_v58  ;;  %v1212_v37 = vsel %vm541_vm4, %v1203_v28, %v1211_v21  ;;  %v923_v43 = vshll.u32 %v3647_v35, 16  ;;  %v922_v47 = vrot.slane %v920_v42, 3  ;;  %v1297_v49 = vrot.slane %v3650_v32, 3  ;;  %v4012_v24 = vld [vmem:[%s4340_s2 + $0x18] sm:$0xff]  }
  0x2f   : > { %v916_v34 = vrot.slane %v914_v26, 4  ;;  %v909_v44 = vor.u32 %v908_v39, %v905_v38  ;;  %v1221_v46 = vsel %vm541_vm4, %v1211_v21, %v1220_v33  ;;  %v1296_v52 = vrot.slane %v3649_v45, 3  ;;  %v3659_v21 = vld [vmem:[%s3906_s26 + $0x4c] ss:$0 sps:$4 sm:$0x33]   ;;  %v3666_v26 = vld [vmem:[%s3906_s26 + $0x30] sm:$0xff]  }
  0x30   : > { %v925_v48 = vrot.slane %v923_v43, 4  ;;  %v1022_v57 = vshrl.u32 %v3653_v50, 16  ;;  %v1025_v59 = vshll.u32 %v3653_v50, 16  ;;  %v1014_v60 = vshrl.u32 %v3652_v56, 16 }
  0x31   : > { %v917_v41 = vor.u32 %v916_v34, %v913_v31  ;;  %v1298_v54 = vsel %vm450_vm3, %v1296_v52, %v1297_v49  ;;  %v1017_v61 = vshll.u32 %v3652_v56, 16  ;;  %v1031_v4 = vshrl.u32 %v3655_v62, 16  ;;  %v3663_v30 = vld [vmem:[%s3906_s26 + $0x24] ss:$0 sps:$4 sm:$0x77]   ;;  %v3669_v34 = vld [vmem:[%s3906_s26 + $0x8] sm:$0xff]  }
  0x32   : > { %v926_v63 = vor.u32 %v925_v48, %v922_v47  ;;  %v1027_v0 = vrot.slane %v1025_v59, 4  ;;  %v1016_v2 = vrot.slane %v1014_v60, 3  ;;  %v1034_v5 = vshll.u32 %v3655_v62, 16  ;;  %v3667_v45 = vld [vmem:[%s3906_s26 + $0x38] ss:$0 sps:$4 sm:$0x77]  }
  0x33   : > { %v918_v51 = vsel %vm541_vm4, %v909_v44, %v917_v41  ;;  %v1019_v3 = vrot.slane %v1017_v61, 4  ;;  %v1033_v13 = vrot.slane %v1031_v4, 3  ;;  %v1383_v16 = vrot.slane %v3658_v9, 3  ;;  %v3662_v47 = vld [vmem:[%s4340_s2] sm:$0xff]  }
  0x34   : > { %3361 = vmatmul.mubr.msk.bf16.vlgmr.msra.gmra.mrb[0].mxu0 %vm302_vm0, %v567_v15  ;;  %v927_v11 = vsel %vm541_vm4, %v917_v41, %v926_v63  ;;  %v1382_v15 = vrot.slane %v3657_v8, 3  ;;  %v1036_v18 = vrot.slane %v1034_v5, 4  ;;  %v1664_v19 = vshrl.u32 %v3661_v10, 16  ;;  %v3665_v41 = vld [vmem:[%s3906_s26 + $0x28] sm:$0xf8]  }
  0x35   : > { %3389 = vmatpush3.bf16.msra.mxu0 %v3640_v53  ;;  %3390 = vmatprep.mubr.msk.bf16.mxu0 %vm302_vm0, %v1212_v37  ;;  %v3651_v53 = vld [vmem:[%s3906_s26 + $0x24] ss:$0 sps:$4 sm:$0x33]   ;;  %v1020_v7 = vor.u32 %v1019_v3, %v1016_v2  ;;  %v1667_v23 = vshll.u32 %v3661_v10, 16  ;;  %v1659_v28 = vshll.u32 %v3660_v22, 16  ;;  %v1673_v33 = vshrl.u32 %v3663_v30, 16 }
  0x36   : > { %3394 = vmatprep.subr.bf16.mxu0 %v3648_v27  ;;  %v1299_v55 = vrot.slane %v3651_v53, 3  ;;  %v1384_v20 = vsel %vm450_vm3, %v1382_v15, %v1383_v16  ;;  %v1666_v25 = vrot.slane %v1664_v19, 3  ;;  %v1037_v35 = vor.u32 %v1036_v18, %v1033_v13  ;;  %v3668_v60 = vld [vmem:[%s3906_s26] sm:$0xf8]   ;;  %v4043_v15 = vld [vmem:[%s4340_s2 + $0x10] sm:$0xff]  }
  0x37   : > { %v1669_v29 = vrot.slane %v1667_v23, 4  ;;  %v1661_v32 = vrot.slane %v1659_v28, 4  ;;  %v1481_v37 = vshrl.u32 %v3666_v26, 16  ;;  %v1385_v38 = vrot.slane %v3659_v21, 3  ;;  %v3677_v21 = vld [vmem:[%s3906_s26 + $0x44] sm:$0xff]  }
  0x38   : > { %3373 = vmatmul.mubr.msk.bf16.vlgmr.msra.gmra.mrb[4].mxu1 %vm302_vm0, %v820_v36  ;;  %v1300_v17 = vsel %vm450_vm3, %v1297_v49, %v1299_v55  ;;  %v1676_v36 = vshll.u32 %v3663_v30, 16  ;;  %v1484_v42 = vshll.u32 %v3666_v26, 16  ;;  %v1675_v43 = vrot.slane %v1673_v33, 3  ;;  %v3099_v26 = vld [vmem:[%s4339_s1 + $0x20] sm:$0xff] }
  0x39   : > { %3377 = vmatpush3.bf16.msra.mxu1 %v3951_v58  ;;  %3378 = vmatprep.mubr.msk.bf16.mxu1 %vm302_vm0, %v918_v51  ;;  %v1024_v58 = vrot.slane %v1022_v57, 3  ;;  %v1483_v44 = vrot.slane %v1481_v37, 3  ;;  %v1473_v49 = vshrl.u32 %v3665_v41, 16  ;;  %v1476_v50 = vshll.u32 %v3665_v41, 16  ;;  %v3101_v37 = vld [vmem:[%s4339_s1 + $0x30] sm:$0xff] }
  0x3a   : > { %3382 = vmatprep.subr.bf16.mxu1 %v3646_v40  ;;  %v1678_v48 = vrot.slane %v1676_v36, 4  ;;  %v1486_v51 = vrot.slane %v1484_v42, 4  ;;  %v1490_v53 = vshrl.u32 %v3667_v45, 16  ;;  %v1386_v61 = vsel %vm450_vm3, %v1383_v16, %v1385_v38  ;;  %v3675_v28 = vld [vmem:[%s3906_s26 + $0x38] ss:$0 sps:$4 sm:$0x77]   ;;  %1142 = vperm.xlu0 %3617, %v3099_v26  }
  0x3b   : > { %v1028_v6 = vor.u32 %v1027_v0, %v1024_v58  ;;  %v1475_v56 = vrot.slane %v1473_v49, 3  ;;  %v1478_v57 = vrot.slane %v1476_v50, 4  ;;  %v3673_v0 = vld [vmem:[%s3906_s26 + $0x30] sm:$0xff]   ;;  %v1756_v2 = vshrl.u32 %v3668_v60, 16  ;;  %v3100_v38 = vld [vmem:[%s4339_s1 + $0x28] sm:$0xff]  ;;  %1152 = vperm.xlu1 %3618, %v3101_v37  }
  0x3c   : > { %3391 = vmatmul.mubr.msk.bf16.vlgmr.msra.gmra.mrb[4].mxu0 %vm302_vm0, %v1221_v46  ;;  %v1764_v46 = vshrl.u32 %v3669_v34, 16  ;;  %v1487_v59 = vor.u32 %v1486_v51, %v1483_v44  ;;  %v1492_v58 = vrot.slane %v1490_v53, 3  ;;  %v1759_v3 = vshll.u32 %v3668_v60, 16  ;;  %v3102_v44 = vld [vmem:[%s4339_s1 + $0x38] sm:$0x3f] }
  0x3d   : > { %3395 = vmatpush3.bf16.msra.mxu0 %v3648_v27  ;;  %3396 = vmatprep.mubr.msk.bf16.mxu0 %vm302_vm0, %v1298_v54  ;;  %v1029_v14 = vsel %vm541_vm4, %v1020_v7, %v1028_v6  ;;  %v1656_v27 = vshrl.u32 %v3660_v22, 16  ;;  %v1038_v52 = vsel %vm541_vm4, %v1028_v6, %v1037_v35  ;;  %v1493_v54 = vshll.u32 %v3667_v45, 16  ;;  %v3671_v6 = vld [vmem:[%s3906_s26 + $0x10] ss:$0 sps:$4 sm:$0x77]   ;;  %v664_v45 = vld [vmem:[%s4339_s1] sm:$0xff] }
  0x3e   : > { %3400 = vmatprep.subr.bf16.mxu0 %v3656_v1  ;;  %v1766_v63 = vrot.slane %v1764_v46, 3  ;;  %v1767_v4 = vshll.u32 %v3669_v34, 16  ;;  %v1679_v5 = vor.u32 %v1678_v48, %v1675_v43  ;;  %v1871_v7 = vshrl.u32 %v3673_v0, 16  ;;  %1147 = vperm.xlu0 %3617, %v3100_v38   ;;  %v3678_v43 = vld [vmem:[%s3906_s26 + $0x4c] ss:$0 sps:$4 sm:$0x77]  }
  0x3f   : > { %v1658_v31 = vrot.slane %v1656_v27, 3  ;;  %v1495_v62 = vrot.slane %v1493_v54, 4  ;;  %v1758_v9 = vrot.slane %v1756_v2, 3  ;;  %v1761_v10 = vrot.slane %v1759_v3, 4  ;;  %1157 = vperm.xlu1 %3618, %v3102_v44   ;;  %v3144_v2 = vld [vmem:[%s4339_s1 + $0x48] sm:$0xff]  ;;  %v3145_v3 = vld [vmem:[%s4339_s1 + $0x50] sm:$0xff] }
  0x40   : > { %v1776_v16 = vshll.u32 %v3671_v6, 16  ;;  %v1874_v18 = vshll.u32 %v3673_v0, 16  ;;  %v1982_v33 = vshrl.u32 %v3677_v21, 16  ;;  %v1880_v36 = vshrl.u32 %v3675_v28, 16  ;;  %v667_v0 = vld [vmem:[%s4339_s1 + $0x18] sm:$0x3f] }
  0x41   : > { %v1662_v39 = vor.u32 %v1661_v32, %v1658_v31  ;;  %v1762_v13 = vor.u32 %v1761_v10, %v1758_v9  ;;  %v3676_v32 = vld [vmem:[%s3906_s26 + $0x3c] sm:$0xf8]   ;;  %v1985_v42 = vshll.u32 %v3677_v21, 16  ;;  %v1991_v50 = vshrl.u32 %v3678_v43, 16  ;;  %v3684_v21 = vld [vmem:[%s4342_s4 + $0x28] sm:$0xff]  }
  0x42   : > { %v1876_v30 = vrot.slane %v1874_v18, 4  ;;  %v1977_v41 = vshll.u32 %v3676_v32, 16  ;;  %v1984_v49 = vrot.slane %v1982_v33, 3  ;;  %v1994_v51 = vshll.u32 %v3678_v43, 16  ;;  %670 = vperm.xlu0 %3617, %v664_v45   ;;  %v3681_v18 = vld [vmem:[%s4342_s4 + $0x10] sm:$0xff]  }
  0x43   : > { %v1993_v60 = vrot.slane %v1991_v50, 3 }
  0x44   : > { %3379 = vmatmul.mubr.msk.bf16.vlgmr.msra.gmra.mrb[4].mxu1 %vm302_vm0, %v927_v11  ;;  %v1769_v11 = vrot.slane %v1767_v4, 4 }
  0x45   : > { %3383 = vmatpush3.bf16.msra.mxu1 %v3646_v40  ;;  %3384 = vmatprep.mubr.msk.bf16.mxu1 %vm302_vm0, %v1029_v14  ;;  %v1670_v40 = vor.u32 %v1669_v29, %v1666_v25  ;;  %v1873_v25 = vrot.slane %v1871_v7, 3  ;;  %v1778_v29 = vrot.slane %v1776_v16, 4  ;;  %v3146_v7 = vld [vmem:[%s4339_s1 + $0x58] sm:$0x3f]  ;;  %v3679_v16 = vld [vmem:[%s4342_s4] sm:$0xff]  }
  0x46   : > { %3412 = vmatprep.subr.bf16.mxu1 %v4001_v12  ;;  %v1770_v14 = vor.u32 %v1769_v11, %v1766_v63  ;;  %v3188_v11 = vld [vmem:[%s4339_s1 + $0x68] sm:$0xff] }
  0x47   : > { %v1671_v55 = vsel %vm541_vm4, %v1662_v39, %v1670_v40  ;;  %v1680_v19 = vsel %vm541_vm4, %v1670_v40, %v1679_v5  ;;  %v1883_v39 = vshll.u32 %v3675_v28, 16  ;;  %v1974_v40 = vshrl.u32 %v3676_v32, 16 }
  0x48   : > { %3397 = vmatmul.mubr.msk.bf16.vlgmr.msra.gmra.mrb[4].mxu0 %vm302_vm0, %v1300_v17  ;;  %v3672_v17 = vld [vmem:[%s3906_s26 + $0x28] sm:$0xf8]   ;;  %v1771_v22 = vsel %vm541_vm4, %v1762_v13, %v1770_v14  ;;  %v3190_v13 = vld [vmem:[%s4339_s1 + $0x78] sm:$0x3f]  ;;  %s3738_s26 = scalar_lea.vmem %s4295_s28, 256 }
  0x49   : > { %3401 = vmatpush3.bf16.msra.mxu0 %v3656_v1  ;;  %3402 = vmatprep.mubr.msk.bf16.mxu0 %vm302_vm0, %v1384_v20  ;;  %v1479_v1 = vor.u32 %v1478_v57, %v1475_v56  ;;  %v1496_v20 = vor.u32 %v1495_v62, %v1492_v58  ;;  %v1863_v23 = vshrl.u32 %v3672_v17, 16  ;;  %v1885_v53 = vrot.slane %v1883_v39, 4  ;;  %v665_v56 = vld [vmem:[%s4339_s1 + $0x8] sm:$0xff]  ;;  %v3674_v57 = vld [vmem:[%s4340_s2 + $0x18] sm:$0xff]   ;;  %v666_v58 = vld [vmem:[%s4339_s1 + $0x10] sm:$0xff]  ;;  %p3739_p11 = scmp.ne.s32.totalorder %s4295_s28, %s3738_s26  ;;  %p3746_p1 = scmp.lt.s32.totalorder %s3744_s13, %s3738_s26 }
  0x4a   : > { %3406 = vmatprep.subr.bf16.mxu0 %v4012_v24  ;;  %v1976_v54 = vrot.slane %v1974_v40, 3  ;;  %675 = vperm.xlu1 %3618, %v665_v56  }
  0x4b   : > { %v1488_v8 = vsel %vm541_vm4, %v1479_v1, %v1487_v59  ;;  %v1865_v31 = vrot.slane %v1863_v23, 3  ;;  %v1497_v34 = vsel %vm541_vm4, %v1487_v59, %v1496_v20  ;;  %v1979_v59 = vrot.slane %v1977_v41, 4  ;;  %v3143_v1 = vld [vmem:[%s4339_s1 + $0x40] sm:$0xff]  ;;  %680 = vperm.xlu0 %3617, %v666_v58   ;;  %v4146_v23 = vld [vmem:[%s4342_s4 + $0x48] sm:$0xff]   ;;  %p3740_p12 = pnand %p3739_p11, %p3879_p5  ;;  %p3747_p2 = por %p3746_p1, %p3745_p0 }
  0x4c   : > { %v3683_v20 = vld [vmem:[%s4342_s4 + $0x20] sm:$0xff]  }
  0x4d   : > { %v1980_v5 = vor.u32 %v1979_v59, %v1976_v54  ;;  %p3741_p13 = pneg %p3740_p12 }
  0x4e   : > { %685 = vperm.xlu1 %3618, %v667_v0  }
  0x4f   : > { %1601 = vperm.xlu0 %3617, %v3143_v1   ;;  %p3748_p3 = pnand %p3747_p2, %p3741_p13 }
  0x50   : > { %3385 = vmatmul.mubr.msk.bf16.vlgmr.msra.gmra.mrb[4].mxu1 %vm302_vm0, %v1038_v52  ;;  %v1882_v52 = vrot.slane %v1880_v36, 3 }
  0x51   : > { %3413 = vmatpush3.bf16.msra.mxu1 %v4001_v12  ;;  %3414 = vmatprep.mubr.msk.bf16.mxu1 %vm302_vm0, %v1671_v55  ;;  %v1773_v12 = vshrl.u32 %v3671_v6, 16  ;;  %v1987_v55 = vrot.slane %v1985_v42, 4 }
  0x52   : > { %3418 = vmatprep.subr.bf16.mxu1 %v3662_v47  ;;  %v1886_v4 = vor.u32 %v1885_v53, %v1882_v52  ;;  %1606 = vperm.xlu1 %3618, %v3144_v2  }
  0x53   : > { %v1775_v27 = vrot.slane %v1773_v12, 3  ;;  %v1988_v6 = vor.u32 %v1987_v55, %v1984_v49  ;;  %1611 = vperm.xlu0 %3617, %v3145_v3   ;;  %v3189_v12 = vld [vmem:[%s4339_s1 + $0x70] sm:$0xff] }
  0x54   : > { %3403 = vmatmul.mubr.msk.bf16.vlgmr.msra.gmra.mrb[4].mxu0 %vm302_vm0, %v1386_v61  ;;  %v1996_v61 = vrot.slane %v1994_v51, 4 }
  0x55   : > { %3407 = vmatpush3.bf16.msra.mxu0 %v4012_v24  ;;  %3408 = vmatprep.mubr.msk.bf16.mxu0 %vm302_vm0, %v1488_v8  ;;  %v1866_v24 = vshll.u32 %v3672_v17, 16  ;;  %v1779_v46 = vor.u32 %v1778_v29, %v1775_v27  ;;  %v3187_v8 = vld [vmem:[%s4339_s1 + $0x60] sm:$0xff]  ;;  %v1989_v10 = vsel %vm541_vm4, %v1980_v5, %v1988_v6  ;;  %v3680_v17 = vld [vmem:[%s4342_s4 + $0x8] sm:$0xff]  }
  0x56   : > { %1616 = vperm.xlu1 %3618, %v3146_v7   ;;  %v4152_v29 = vld [vmem:[%s4341_s3] ss:$0 sm:$0xff] }
  0x57   : > { %v1868_v35 = vrot.slane %v1866_v24, 4  ;;  %v1780_v62 = vsel %vm541_vm4, %v1770_v14, %v1779_v46  ;;  %2102 = vperm.xlu0 %3617, %v3187_v8   ;;  %v1997_v14 = vor.u32 %v1996_v61, %v1993_v60 }
  0x58   : > { %3415 = vmatmul.mubr.msk.bf16.vlgmr.msra.gmra.mrb[8].mxu1 %vm302_vm0, %v1680_v19  ;;  %v3682_v19 = vld [vmem:[%s4342_s4 + $0x18] sm:$0xff]  }
  0x59   : > { %3419 = vmatpush3.bf16.msra.mxu1 %v3662_v47  ;;  %3420 = vmatprep.mubr.msk.bf16.mxu1 %vm302_vm0, %v1771_v22  ;;  %v1877_v47 = vor.u32 %v1876_v30, %v1873_v25  ;;  %v1869_v48 = vor.u32 %v1868_v35, %v1865_v31  ;;  %v4140_v22 = vld [vmem:[%s4342_s4 + $0x30] sm:$0xff]  }
  0x5a   : > { %3424 = vmatprep.subr.bf16.mxu1 %v4043_v15  ;;  %2107 = vperm.xlu1 %3618, %v3188_v11  }
  0x5b   : > { %v1878_v63 = vsel %vm541_vm4, %v1869_v48, %v1877_v47  ;;  %v1887_v9 = vsel %vm541_vm4, %v1877_v47, %v1886_v4  ;;  %2112 = vperm.xlu0 %3617, %v3189_v12   ;;  %3436 = vmatprep.subr.bf16.mxu0 %v3682_v19 }
  0x5e   : > { %2117 = vperm.xlu1 %3618, %v3190_v13  }
  0x60   : > { %3409 = vmatmul.mubr.msk.bf16.vlgmr.msra.gmra.mrb[4].mxu0 %vm302_vm0, %v1497_v34 }
  0x61   : > { %3437 = vmatpush3.bf16.msra.mxu0 %v3682_v19 }
  0x62   : > { %3438 = vmatprep.subr.bf16.mxu0 %v3683_v20 }
  0x64   : > { %3421 = vmatmul.mubr.msk.bf16.vlgmr.msra.gmra.mrb[8].mxu1 %vm302_vm0, %v1780_v62 }
  0x65   : > { %3425 = vmatpush3.bf16.msra.mxu1 %v4043_v15  ;;  %3426 = vmatprep.mubr.msk.bf16.mxu1 %vm302_vm0, %v1878_v63  ;;  %v1998_v15 = vsel %vm541_vm4, %v1988_v6, %v1997_v14 }
  0x66   : > { %3430 = vmatprep.subr.bf16.mxu1 %v3674_v57  ;;  %3439 = vmatpush3.bf16.msra.mxu0 %v3683_v20 }
  0x67   : > { %3440 = vmatprep.subr.bf16.mxu0 %v3684_v21 }
  0x6a   : > { %3441 = vmatpush3.bf16.msra.mxu0 %v3684_v21 }
  0x6b   : > { %3456 = vmatprep.subr.bf16.mxu0 %v4140_v22 }
  0x70   : > { %3427 = vmatmul.mubr.msk.bf16.vlgmr.msra.gmra.mrb[8].mxu1 %vm302_vm0, %v1887_v9 }
  0x71   : > { %3431 = vmatpush3.bf16.msra.mxu1 %v3674_v57  ;;  %3432 = vmatprep.mubr.msk.bf16.mxu1 %vm302_vm0, %v1989_v10 }
  0x72   : > { %3446 = vmatprep.subr.bf16.mxu1 %v3679_v16 }
  0x7c   : > { %3433 = vmatmul.mubr.msk.bf16.vlgmr.msra.gmra.mrb[8].mxu1 %vm302_vm0, %v1998_v15 }
  0x7d   : > { %3447 = vmatpush3.bf16.msra.mxu1 %v3679_v16 }
  0x7e   : > { %3448 = vmatprep.subr.bf16.mxu1 %v3680_v17 }
  0x81   : > { %3449 = vmatpush3.bf16.msra.mxu1 %v3680_v17 }
  0x82   : > { %3450 = vmatprep.subr.bf16.mxu1 %v3681_v18 }
  0x85   : > { %3451 = vmatpush3.bf16.msra.mxu1 %v3681_v18 }
  0x86   : > { %3466 = vmatprep.subr.bf16.mxu1 %v4146_v23 }
  0xb9   : > { %v4154_v34 = vpop.permute.xlu0 %1142 }
  0xba   : > { %v4157_v38 = vpop.permute.xlu1 %1152 }
  0xbd   : > { %v4162_v47 = vpop.permute.xlu0 %1147 }
  0xbe   : > { %v4164_v48 = vpop.permute.xlu1 %1157 }
  0xc1   : > { %v671_v49 = vpop.permute.xlu0 %670 }
  0xc9   : > { %v676_v50 = vpop.permute.xlu1 %675 }
  0xca   : > { %v681_v1 = vpop.permute.xlu0 %680 }
  0xcd   : > { %v686_v2 = vpop.permute.xlu1 %685 }
  0xf7   : > { %v3344_v24 = vpop.f32.mrb[0].mxu1 }
  0xf8   : > { %v343_v25 = vpop.f32.mrb[1].mxu1 }
  0xf9   : > { %v3345_v26 = vpop.f32.mrb[2].mxu1 }
  0xfa   : > { %v346_v27 = vpop.f32.mrb[3].mxu1 }
 0x107   : > { %v3362_v28 = vpop.f32.mrb[0].mxu0 }
 0x108   : > { %v3526_v30 = vadd.f32 %v3362_v28, %v3344_v24  ;;  %v614_v31 = vpop.f32.mrb[1].mxu0  ;;  %v3690_v28 = vld [vmem:[%s4342_s4 + $0x58] sm:$0xff]  }
 0x109   : > { %v3527_v32 = vadd.f32 %v614_v31, %v343_v25  ;;  %v3363_v33 = vpop.f32.mrb[2].mxu0  ;;  %v4187_v31 = vld [vmem:[%s4342_s4 + $0x78] sm:$0xff]  }
 0x10a   : > { %v642_v35 = vadd.f32 %v3526_v30, %v4152_v29  ;;  %v3528_v36 = vadd.f32 %v3363_v33, %v3345_v26  ;;  %v617_v37 = vpop.f32.mrb[3].mxu0  ;;  %v3689_v26 = vld [vmem:[%s4342_s4 + $0x50] sm:$0xff]  }
 0x10b   : > { %v640_v39 = vadd.f32 %v3527_v32, %v4152_v29  ;;  %v3529_v40 = vadd.f32 %v617_v37, %v346_v27 }
 0x10c   : > { %v650_v41 = vmul.f32 0.70710677, %v642_v35  ;;  %v643_v42 = vadd.f32 %v3528_v36, %v4152_v29  ;;  %v646_v53 = vmul.f32 0.5, %v642_v35 }
 0x10d   : > { %v648_v43 = vmul.f32 0.70710677, %v640_v39  ;;  %v641_v44 = vadd.f32 %v3529_v40, %v4152_v29  ;;  %v644_v56 = vmul.f32 0.5, %v640_v39 }
 0x10e   : > { %3706 = verf.f32 %v650_v41  ;;  %v651_v45 = vmul.f32 0.70710677, %v643_v42  ;;  %v647_v61 = vmul.f32 0.5, %v643_v42 }
 0x10f   : > { %3708 = verf.f32 %v648_v43  ;;  %v649_v46 = vmul.f32 0.70710677, %v641_v44  ;;  %v645_v63 = vmul.f32 0.5, %v641_v44 }
 0x110   : > { %3710 = verf.f32 %v651_v45 }
 0x111   : > { %3712 = verf.f32 %v649_v46 }
 0x118   : > { %v3707_v51 = vpop.eup %3706 }
 0x119   : > { %v3709_v52 = vpop.eup %3708  ;;  %v658_v54 = vadd.f32 1.0, %v3707_v51 }
 0x11a   : > { %v3711_v55 = vpop.eup %3710  ;;  %v656_v57 = vadd.f32 1.0, %v3709_v52 }
 0x11b   : > { %v3713_v59 = vpop.eup %3712  ;;  %v662_v60 = vmul.f32 %v658_v54, %v646_v53  ;;  %v659_v58 = vadd.f32 1.0, %v3711_v55 }
 0x11c   : > { %v660_v62 = vmul.f32 %v656_v57, %v644_v56  ;;  %v657_v0 = vadd.f32 1.0, %v3713_v59 }
 0x11d   : > { %v663_v3 = vmul.f32 %v659_v58, %v647_v61  ;;  %v690_v5 = vmul.f32 %v681_v1, %v662_v60 }
 0x11e   : > { %v661_v4 = vmul.f32 %v657_v0, %v645_v63  ;;  %v688_v7 = vmul.f32 %v671_v49, %v660_v62 }
 0x11f   : > { %v691_v6 = vmul.f32 %v686_v2, %v663_v3 }
 0x120   : > { %v689_v8 = vmul.f32 %v676_v50, %v661_v4 }
 0x121   : > { %v693_v9 = vpack.c.bf16 %v691_v6, %v690_v5 }
 0x122   : > { %v692_v10 = vpack.c.bf16 %v689_v8, %v688_v7  ;;  %v1607_v8 = vpop.permute.xlu1 %1606 }
 0x123   : > { %697 = vst.msk [vmem:[#allocation2 + $0x8] sm:$0x7f] %vm696_vm5, %v693_v9  ;;  %v3386_v11 = vpop.f32.mrb[4].mxu1 }
 0x124   : > { %695 = vst.msk [vmem:[#allocation2] sm:$0xff] %vm694_vm6, %v692_v10  ;;  %v1113_v12 = vadd.f32 %v3386_v11, %v4152_v29  ;;  %v1085_v13 = vpop.f32.mrb[5].mxu1 }
 0x125   : > { %v1111_v14 = vadd.f32 %v4152_v29, %v1085_v13  ;;  %v3387_v15 = vpop.f32.mrb[6].mxu1 }
 0x126   : > { %v1121_v16 = vmul.f32 0.70710677, %v1113_v12  ;;  %v1114_v17 = vadd.f32 %v3387_v15, %v4152_v29  ;;  %v1088_v18 = vpop.f32.mrb[7].mxu1  ;;  %v1117_v37 = vmul.f32 0.5, %v1113_v12 }
 0x127   : > { %v1119_v19 = vmul.f32 0.70710677, %v1111_v14  ;;  %v1112_v20 = vadd.f32 %v4152_v29, %v1088_v18  ;;  %v1115_v42 = vmul.f32 0.5, %v1111_v14 }
 0x128   : > { %3714 = verf.f32 %v1121_v16  ;;  %v1122_v21 = vmul.f32 0.70710677, %v1114_v17  ;;  %v1118_v51 = vmul.f32 0.5, %v1114_v17 }
 0x129   : > { %3716 = verf.f32 %v1119_v19  ;;  %v1120_v24 = vmul.f32 0.70710677, %v1112_v20  ;;  %v1116_v55 = vmul.f32 0.5, %v1112_v20  ;;  %v3686_v20 = vld [vmem:[%s4342_s4 + $0x38] sm:$0xff]  }
 0x12a   : > { %3718 = verf.f32 %v1122_v21  ;;  %v2130_v27 = vld [vmem:[#allocation2 + $0x8] sm:$0xf] }
 0x12b   : > { %v4172_v25 = vld [vmem:[#allocation2] sm:$0xff]  ;;  %3720 = verf.f32 %v1120_v24  ;;  %v2289_v5 = vld [vmem:[#allocation2 + $0x8] sm:$0x1f] }
 0x12c   : > { %3452 = vmatprep.mubr.msk.bf16.mxu1 %vm694_vm6, %v4172_v25  ;;  %v2298_v3 = vshll.u32 %v4172_v25, 16 }
 0x12d   : > { %3453 = vmatmul.mubr.msk.bf16.vlgmr.msra.gmra.mrb[12].mxu1 %vm694_vm6, %v2130_v27 }
 0x12e   : > { %3467 = vmatpush3.bf16.msra.mxu1 %v4146_v23  ;;  %v2300_v6 = vrot.slane %v2298_v3, 1 }
 0x12f   : > { %3468 = vmatprep.subr.bf16.mxu1 %v3689_v26 }
 0x132   : > { %3469 = vmatpush3.bf16.msra.mxu1 %v3689_v26  ;;  %v3715_v32 = vpop.eup %3714 }
 0x133   : > { %v3410_v30 = vpop.f32.mrb[4].mxu0  ;;  %3470 = vmatprep.subr.bf16.mxu1 %v3690_v28  ;;  %v3717_v36 = vpop.eup %3716  ;;  %v1129_v23 = vadd.f32 1.0, %v3715_v32 }
 0x134   : > { %v1572_v33 = vadd.f32 %v3410_v30, %v4152_v29  ;;  %v1544_v35 = vpop.f32.mrb[5].mxu0  ;;  %v3719_v41 = vpop.eup %3718  ;;  %v1127_v43 = vadd.f32 1.0, %v3717_v36 }
 0x135   : > { %v1570_v39 = vadd.f32 %v4152_v29, %v1544_v35  ;;  %v3411_v40 = vpop.f32.mrb[6].mxu0  ;;  %v3721_v49 = vpop.eup %3720  ;;  %v1133_v50 = vmul.f32 %v1129_v23, %v1117_v37  ;;  %v1130_v52 = vadd.f32 1.0, %v3719_v41  ;;  %v3688_v23 = vld [vmem:[%s4342_s4 + $0x40] sm:$0xff]  }
 0x136   : > { %v1580_v44 = vmul.f32 0.70710677, %v1572_v33  ;;  %v1573_v45 = vadd.f32 %v3411_v40, %v4152_v29  ;;  %v1547_v46 = vpop.f32.mrb[7].mxu0  ;;  %3471 = vmatpush3.bf16.msra.mxu1 %v3690_v28  ;;  %v1131_v54 = vmul.f32 %v1127_v43, %v1115_v42  ;;  %v1128_v56 = vadd.f32 1.0, %v3721_v49  ;;  %v1617_v30 = vpop.permute.xlu1 %1616 }
 0x137   : > { %v1578_v53 = vmul.f32 0.70710677, %v1570_v39  ;;  %3486 = vmatprep.subr.bf16.mxu1 %v4187_v31  ;;  %v1134_v57 = vmul.f32 %v1130_v52, %v1118_v51  ;;  %v1571_v61 = vadd.f32 %v4152_v29, %v1547_v46  ;;  %v1162_v58 = vmul.f32 %v4157_v38, %v1133_v50  ;;  %v3697_v52 = vld [vmem:[%s4342_s4 + $0x68] sm:$0xff]  }
 0x138   : > { %3722 = verf.f32 %v1580_v44  ;;  %v1581_v59 = vmul.f32 0.70710677, %v1573_v45  ;;  %v1132_v60 = vmul.f32 %v1128_v56, %v1116_v55  ;;  %v1160_v63 = vmul.f32 %v4154_v34, %v1131_v54  ;;  %v1602_v34 = vpop.permute.xlu0 %1601 }
 0x139   : > { %3724 = verf.f32 %v1578_v53  ;;  %v1163_v62 = vmul.f32 %v4164_v48, %v1134_v57  ;;  %v1579_v1 = vmul.f32 0.70710677, %v1571_v61  ;;  %v2296_v48 = vshrl.u32 %v4172_v25, 16 }
 0x13a   : > { %3726 = verf.f32 %v1581_v59  ;;  %v1161_v0 = vmul.f32 %v4162_v47, %v1132_v60  ;;  %v2303_v47 = vshll.u32 %v2289_v5, 16  ;;  %v1576_v10 = vmul.f32 0.5, %v1572_v33 }
 0x13b   : > { %v1165_v2 = vpack.c.bf16 %v1163_v62, %v1162_v58  ;;  %3728 = verf.f32 %v1579_v1  ;;  %v2301_v12 = vor.u32 %v2300_v6, %v2296_v48  ;;  %v1577_v14 = vmul.f32 0.5, %v1573_v45  ;;  %v3699_v58 = vld [vmem:[%s4342_s4 + $0x70] sm:$0xff]  }
 0x13c   : > { %v1164_v4 = vpack.c.bf16 %v1161_v0, %v1160_v63  ;;  %v1574_v17 = vmul.f32 0.5, %v1570_v39  ;;  %v2305_v19 = vrot.slane %v2303_v47, 1  ;;  %v1575_v26 = vmul.f32 0.5, %v1571_v61  ;;  %v1612_v32 = vpop.permute.xlu0 %1611  ;;  %v3692_v63 = vld [vmem:[%s4342_s4 + $0x80] sm:$0xff]   ;;  %v3694_v47 = vld [vmem:[%s4342_s4 + $0xa8] sm:$0xff]  }
 0x13d   : > { %1168 = vst.msk [vmem:[#allocation2 + $0x18] sm:$0x7f] %vm696_vm5, %v1165_v2  ;;  %v2307_v43 = vshrl.u32 %v2289_v5, 16  ;;  %v3693_v5 = vld [vmem:[%s4342_s4 + $0x88] sm:$0xff]  }
 0x13e   : > { %1167 = vst.msk [vmem:[#allocation2 + $0x10] sm:$0xff] %vm694_vm6, %v1164_v4  ;;  %v2306_v33 = vsel %vm280_vm1, %v2301_v12, %v2305_v19  ;;  %v4238_v4 = vld [vmem:[%s4342_s4 + $0x90] sm:$0xff]  }
 0x13f   : > { %v2309_v49 = vor.u32 %v2307_v43, %v2305_v19 }
 0x142   : > { %v3723_v38 = vpop.eup %3722 }
 0x143   : > { %v3725_v7 = vpop.eup %3724  ;;  %v1588_v9 = vadd.f32 1.0, %v3723_v38 }
 0x144   : > { %v3727_v11 = vpop.eup %3726  ;;  %v1586_v13 = vadd.f32 1.0, %v3725_v7  ;;  %v2138_v25 = vld [vmem:[#allocation2 + $0x18] sm:$0xf] }
 0x145   : > { %v1589_v15 = vadd.f32 1.0, %v3727_v11  ;;  %v1592_v16 = vmul.f32 %v1588_v9, %v1576_v10  ;;  %v2137_v18 = vld [vmem:[#allocation2 + $0x10] sm:$0xff]  ;;  %v3729_v21 = vpop.eup %3728  ;;  %v2736_v7 = vld [vmem:[#allocation2 + $0x18] sm:$0x7f]  ;;  %v2103_v9 = vpop.permute.xlu0 %2102 }
 0x146   : > { %3442 = vmatprep.mubr.msk.bf16.mxu0 %vm694_vm6, %v2137_v18  ;;  %v1587_v27 = vadd.f32 1.0, %v3729_v21  ;;  %v1590_v28 = vmul.f32 %v1586_v13, %v1574_v17  ;;  %v2746_v13 = vrot.slane %v2736_v7, 3 }
 0x147   : > { %v1593_v24 = vmul.f32 %v1589_v15, %v1577_v14  ;;  %3443 = vmatmul.mubr.msk.bf16.vlgmr.msra.gmra.mrb[8].mxu0 %vm694_vm6, %v2138_v25  ;;  %v1621_v36 = vmul.f32 %v1612_v32, %v1592_v16 }
 0x148   : > { %3457 = vmatpush3.bf16.msra.mxu0 %v4140_v22  ;;  %3462 = vmatprep.mubr.msk.bf16.mxu0 %vm694_vm6, %v2306_v33  ;;  %v1591_v37 = vmul.f32 %v1587_v27, %v1575_v26  ;;  %v1619_v41 = vmul.f32 %v1602_v34, %v1590_v28  ;;  %v3695_v22 = vld [vmem:[%s4342_s4 + $0x60] sm:$0xff]   ;;  %v2108_v34 = vpop.permute.xlu1 %2107 }
 0x149   : > { %v1622_v35 = vmul.f32 %v1617_v30, %v1593_v24  ;;  %3458 = vmatprep.subr.bf16.mxu0 %v3686_v20  ;;  %v3696_v30 = vld [vmem:[%s4342_s4 + $0xb0] sm:$0xff]  }
 0x14a   : > { %v1620_v40 = vmul.f32 %v1607_v8, %v1591_v37  ;;  %v2735_v8 = vld [vmem:[#allocation2 + $0x10] sm:$0xf8] }
 0x14b   : > { %v1624_v39 = vpack.c.bf16 %v1622_v35, %v1621_v36  ;;  %v2745_v18 = vrot.slane %v2735_v8, 3  ;;  %v2113_v35 = vpop.permute.xlu0 %2112 }
 0x14c   : > { %3459 = vmatpush3.bf16.msra.mxu0 %v3686_v20  ;;  %v1623_v42 = vpack.c.bf16 %v1620_v40, %v1619_v41  ;;  %v2118_v33 = vpop.permute.xlu1 %2117 }
 0x14d   : > { %1627 = vst.msk [vmem:[#allocation2 + $0x28] sm:$0x7f] %vm696_vm5, %v1624_v39  ;;  %3460 = vmatprep.subr.bf16.mxu0 %v3688_v23  ;;  %v2747_v37 = vsel %vm450_vm3, %v2745_v18, %v2746_v13 }
 0x14e   : > { %1626 = vst.msk [vmem:[#allocation2 + $0x20] sm:$0xff] %vm694_vm6, %v1623_v42  ;;  %v3698_v42 = vld [vmem:[%s4342_s4 + $0xb8] sm:$0xff]  }
 0x14f   : > { %v3434_v44 = vpop.f32.mrb[8].mxu1 }
 0x150   : > { %v2073_v45 = vadd.f32 %v3434_v44, %v4152_v29  ;;  %3461 = vmatpush3.bf16.msra.mxu0 %v3688_v23  ;;  %v2045_v46 = vpop.f32.mrb[9].mxu1  ;;  %v2647_v44 = vld [vmem:[#allocation2] sm:$0xf8] }
 0x151   : > { %v2071_v50 = vadd.f32 %v4152_v29, %v2045_v46  ;;  %v3435_v51 = vpop.f32.mrb[10].mxu1  ;;  %3476 = vmatprep.subr.bf16.mxu0 %v3695_v22  ;;  %v2657_v46 = vrot.slane %v2647_v44, 3 }
 0x152   : > { %v2081_v53 = vmul.f32 0.70710677, %v2073_v45  ;;  %v2074_v54 = vadd.f32 %v3435_v51, %v4152_v29  ;;  %v2048_v55 = vpop.f32.mrb[11].mxu1  ;;  %v2077_v11 = vmul.f32 0.5, %v2073_v45  ;;  %v2648_v45 = vld [vmem:[#allocation2 + $0x8] sm:$0x7f] }
 0x153   : > { %v2079_v56 = vmul.f32 0.70710677, %v2071_v50  ;;  %v2072_v57 = vadd.f32 %v4152_v29, %v2048_v55  ;;  %3463 = vmatmul.mubr.msk.bf16.vlgmr.msra.gmra.mrb[12].mxu0 %vm694_vm6, %v2309_v49  ;;  %v2075_v15 = vmul.f32 0.5, %v2071_v50  ;;  %v2658_v49 = vrot.slane %v2648_v45, 3  ;;  %v2823_v50 = vld [vmem:[#allocation2 + $0x8] sm:$0xff] }
 0x154   : > { %3730 = verf.f32 %v2081_v53  ;;  %v2082_v59 = vmul.f32 0.70710677, %v2074_v54  ;;  %v2551_v60 = vld [vmem:[#allocation2 + $0x28] sm:$0x1f]  ;;  %3477 = vmatpush3.bf16.msra.mxu0 %v3695_v22  ;;  %v2078_v21 = vmul.f32 0.5, %v2074_v54  ;;  %v2831_v54 = vshrl.u32 %v2647_v44, 16 }
 0x155   : > { %3732 = verf.f32 %v2079_v56  ;;  %v2080_v61 = vmul.f32 0.70710677, %v2072_v57  ;;  %3478 = vmatprep.subr.bf16.mxu0 %v3697_v52  ;;  %v2385_v62 = vld [vmem:[#allocation2 + $0x20] sm:$0xff]  ;;  %v2386_v0 = vld [vmem:[#allocation2 + $0x28] sm:$0xf]  ;;  %v2565_v1 = vshll.u32 %v2551_v60, 16  ;;  %v2659_v55 = vsel %vm450_vm3, %v2657_v46, %v2658_v49 }
 0x156   : > { %3734 = verf.f32 %v2082_v59  ;;  %3472 = vmatprep.mubr.msk.bf16.mxu1 %vm694_vm6, %v2385_v62  ;;  %v2560_v29 = vshll.u32 %v2385_v62, 16  ;;  %v2558_v2 = vshrl.u32 %v2385_v62, 16  ;;  %v2569_v17 = vshrl.u32 %v2551_v60, 16  ;;  %v3702_v60 = vld [vmem:[%s4342_s4 + $0xa0] sm:$0xff]  }
 0x157   : > { %3736 = verf.f32 %v2080_v61  ;;  %3473 = vmatmul.mubr.msk.bf16.vlgmr.msra.gmra.mrb[16].mxu1 %vm694_vm6, %v2386_v0  ;;  %v2567_v38 = vrot.slane %v2565_v1, 1  ;;  %v2076_v26 = vmul.f32 0.5, %v2072_v57  ;;  %v2834_v56 = vshll.u32 %v2647_v44, 16 }
 0x158   : > { %3479 = vmatpush3.bf16.msra.mxu0 %v3697_v52  ;;  %v2562_v3 = vrot.slane %v2560_v29, 1  ;;  %3487 = vmatpush3.bf16.msra.mxu1 %v4187_v31  ;;  %v3701_v52 = vld [vmem:[%s4342_s4 + $0x98] sm:$0xff]   ;;  %v2839_v57 = vshrl.u32 %v2823_v50, 16  ;;  %v2842_v59 = vshll.u32 %v2823_v50, 16  ;;  %v2833_v61 = vrot.slane %v2831_v54, 3  ;;  %v3703_v29 = vld [vmem:[%s4342_s4 + $0xc0] sm:$0xff]  }
 0x159   : > { %3480 = vmatprep.subr.bf16.mxu0 %v3699_v58  ;;  %3488 = vmatprep.subr.bf16.mxu1 %v3692_v63  ;;  %v2571_v28 = vor.u32 %v2569_v17, %v2567_v38 }
 0x15a   : > { %v2563_v6 = vor.u32 %v2562_v3, %v2558_v2  ;;  %v2841_v62 = vrot.slane %v2839_v57, 3  ;;  %v3704_v2 = vld [vmem:[%s4342_s4 + $0xc8] sm:$0xff]  }
 0x15c   : > { %3481 = vmatpush3.bf16.msra.mxu0 %v3699_v58  ;;  %3489 = vmatpush3.bf16.msra.mxu1 %v3692_v63  ;;  %v2568_v48 = vsel %vm280_vm1, %v2563_v6, %v2567_v38  ;;  %v2836_v58 = vrot.slane %v2834_v56, 4  ;;  %v2844_v63 = vrot.slane %v2842_v59, 4 }
 0x15d   : > { %3496 = vmatprep.subr.bf16.mxu0 %v4238_v4  ;;  %3492 = vmatprep.mubr.msk.bf16.mxu1 %vm694_vm6, %v2568_v48 }
 0x15e   : > { %v3731_v31 = vpop.eup %3730  ;;  %3490 = vmatprep.subr.bf16.mxu1 %v3693_v5  ;;  %v2837_v0 = vor.u32 %v2836_v58, %v2833_v61  ;;  %v2845_v1 = vor.u32 %v2844_v63, %v2841_v62  ;;  %v3236_v61 = vld [vmem:[%s4343_s5] ss:$0 sm:$0xff] }
 0x15f   : > { %v3733_v10 = vpop.eup %3732  ;;  %v2089_v12 = vadd.f32 1.0, %v3731_v31 }
 0x160   : > { %v3735_v14 = vpop.eup %3734  ;;  %v2087_v16 = vadd.f32 1.0, %v3733_v10  ;;  %3491 = vmatpush3.bf16.msra.mxu1 %v3693_v5  ;;  %v2846_v3 = vsel %vm541_vm4, %v2837_v0, %v2845_v1 }
 0x161   : > { %v3737_v19 = vpop.eup %3736  ;;  %v2093_v20 = vmul.f32 %v2089_v12, %v2077_v11  ;;  %v2090_v24 = vadd.f32 1.0, %v3735_v14  ;;  %3506 = vmatprep.subr.bf16.mxu1 %v3694_v47 }
 0x162   : > { %v2091_v25 = vmul.f32 %v2087_v16, %v2075_v15  ;;  %v2088_v27 = vadd.f32 1.0, %v3737_v19 }
 0x163   : > { %v2094_v32 = vmul.f32 %v2090_v24, %v2078_v21  ;;  %3493 = vmatmul.mubr.msk.bf16.vlgmr.msra.gmra.mrb[20].mxu1 %vm694_vm6, %v2571_v28  ;;  %v2122_v23 = vmul.f32 %v2113_v35, %v2093_v20 }
 0x164   : > { %v2092_v36 = vmul.f32 %v2088_v27, %v2076_v26  ;;  %3507 = vmatpush3.bf16.msra.mxu1 %v3694_v47  ;;  %3512 = vmatprep.mubr.msk.bf16.mxu1 %vm694_vm6, %v2747_v37  ;;  %v2120_v40 = vmul.f32 %v2103_v9, %v2091_v25 }
 0x165   : > { %v2123_v39 = vmul.f32 %v2118_v33, %v2094_v32  ;;  %3508 = vmatprep.subr.bf16.mxu1 %v3696_v30 }
 0x166   : > { %v2121_v41 = vmul.f32 %v2108_v34, %v2092_v36 }
 0x167   : > { %v2125_v22 = vpack.c.bf16 %v2123_v39, %v2122_v23 }
 0x168   : > { %v2124_v43 = vpack.c.bf16 %v2121_v41, %v2120_v40  ;;  %3509 = vmatpush3.bf16.msra.mxu1 %v3696_v30 }
 0x169   : > { %2128 = vst.msk [vmem:[#allocation2 + $0x38] sm:$0x7f] %vm696_vm5, %v2125_v22  ;;  %3510 = vmatprep.subr.bf16.mxu1 %v3698_v42 }
 0x16a   : > { %2127 = vst.msk [vmem:[#allocation2 + $0x30] sm:$0xff] %vm694_vm6, %v2124_v43 }
 0x16c   : > { %3511 = vmatpush3.bf16.msra.mxu1 %v3698_v42 }
 0x16f   : > { %3513 = vmatmul.mubr.msk.bf16.vlgmr.msra.gmra.mrb[24].mxu1 %vm694_vm6, %v2746_v13 }
 0x170   : > { %v2469_v53 = vld [vmem:[#allocation2 + $0x38] sm:$0xf] }
 0x171   : > { %v2468_v51 = vld [vmem:[#allocation2 + $0x30] sm:$0xff] }
 0x172   : > { %3482 = vmatprep.mubr.msk.bf16.mxu0 %vm694_vm6, %v2468_v51 }
 0x173   : > { %3483 = vmatmul.mubr.msk.bf16.vlgmr.msra.gmra.mrb[16].mxu0 %vm694_vm6, %v2469_v53 }
 0x174   : > { %3497 = vmatpush3.bf16.msra.mxu0 %v4238_v4  ;;  %3502 = vmatprep.mubr.msk.bf16.mxu0 %vm694_vm6, %v2659_v55  ;;  %v3705_v4 = vld [vmem:[%s4342_s4 + $0xd0] sm:$0xff]  }
 0x175   : > { %3498 = vmatprep.subr.bf16.mxu0 %v3701_v52 }
 0x178   : > { %3499 = vmatpush3.bf16.msra.mxu0 %v3701_v52 }
 0x179   : > { %3500 = vmatprep.subr.bf16.mxu0 %v3702_v60 }
 0x17c   : > { %3501 = vmatpush3.bf16.msra.mxu0 %v3702_v60 }
 0x17d   : > { %3516 = vmatprep.subr.bf16.mxu0 %v3703_v29 }
 0x17f   : > { %3503 = vmatmul.mubr.msk.bf16.vlgmr.msra.gmra.mrb[20].mxu0 %vm694_vm6, %v2658_v49 }
 0x180   : > { %3517 = vmatpush3.bf16.msra.mxu0 %v3703_v29  ;;  %3522 = vmatprep.mubr.msk.bf16.mxu0 %vm694_vm6, %v2846_v3 }
 0x181   : > { %3518 = vmatprep.subr.bf16.mxu0 %v3704_v2 }
 0x184   : > { %3519 = vmatpush3.bf16.msra.mxu0 %v3704_v2 }
 0x185   : > { %3520 = vmatprep.subr.bf16.mxu0 %v3705_v4 }
 0x188   : > { %3521 = vmatpush3.bf16.msra.mxu0 %v3705_v4 }
 0x18b   : > { %3523 = vmatmul.mubr.msk.bf16.vlgmr.msra.gmra.mrb[24].mxu0 %vm694_vm6, %v2845_v1 }
 0x200   : > { %v3454_v5 = vpop.f32.mrb[12].mxu1 }
 0x201   : > { %v2275_v6 = vpop.f32.mrb[13].mxu1 }
 0x202   : > { %v3455_v38 = vpop.f32.mrb[14].mxu1 }
 0x203   : > { %v2278_v7 = vpop.f32.mrb[15].mxu1 }
 0x21a   : > { %v3444_v48 = vpop.f32.mrb[8].mxu0 }
 0x21b   : > { %v2284_v8 = vadd.f32 %v3454_v5, %v3444_v48  ;;  %v2203_v31 = vpop.f32.mrb[9].mxu0 }
 0x21c   : > { %v2276_v34 = vadd.f32 %v2275_v6, %v2203_v31  ;;  %v3445_v9 = vpop.f32.mrb[10].mxu0 }
 0x21d   : > { %v2206_v47 = vpop.f32.mrb[11].mxu0 }
 0x21e   : > { %v2279_v10 = vadd.f32 %v2278_v7, %v2206_v47 }
 0x226   : > { %v3464_v11 = vpop.f32.mrb[12].mxu0 }
 0x227   : > { %v2384_v12 = vadd.f32 %v3464_v11, %v2284_v8  ;;  %v2368_v13 = vpop.f32.mrb[13].mxu0 }
 0x228   : > { %v2382_v14 = vadd.f32 %v2368_v13, %v2276_v34  ;;  %v3465_v15 = vpop.f32.mrb[14].mxu0 }
 0x229   : > { %v2371_v16 = vpop.f32.mrb[15].mxu0 }
 0x22a   : > { %v2383_v17 = vadd.f32 %v2371_v16, %v2279_v10  ;;  %v3474_v18 = vpop.f32.mrb[16].mxu1 }
 0x22b   : > { %v2467_v19 = vadd.f32 %v3474_v18, %v2384_v12  ;;  %v2451_v20 = vpop.f32.mrb[17].mxu1 }
 0x22c   : > { %v2465_v21 = vadd.f32 %v2451_v20, %v2382_v14  ;;  %v3475_v24 = vpop.f32.mrb[18].mxu1 }
 0x22d   : > { %v2454_v25 = vpop.f32.mrb[19].mxu1 }
 0x22e   : > { %v2466_v26 = vadd.f32 %v2454_v25, %v2383_v17 }
 0x236   : > { %v3494_v27 = vpop.f32.mrb[20].mxu1 }
 0x237   : > { %v2630_v28 = vpop.f32.mrb[21].mxu1 }
 0x238   : > { %v3495_v30 = vpop.f32.mrb[22].mxu1 }
 0x239   : > { %v2633_v32 = vpop.f32.mrb[23].mxu1 }
 0x242   : > { %v3514_v33 = vpop.f32.mrb[24].mxu1 }
 0x243   : > { %v2806_v35 = vpop.f32.mrb[25].mxu1 }
 0x244   : > { %v3515_v36 = vpop.f32.mrb[26].mxu1 }
 0x245   : > { %v2809_v37 = vpop.f32.mrb[27].mxu1 }
 0x246   : > { %v3484_v23 = vpop.f32.mrb[16].mxu0 }
 0x247   : > { %v2550_v39 = vadd.f32 %v3484_v23, %v2467_v19  ;;  %v2534_v40 = vpop.f32.mrb[17].mxu0 }
 0x248   : > { %v2548_v41 = vadd.f32 %v2534_v40, %v2465_v21  ;;  %v3485_v42 = vpop.f32.mrb[18].mxu0 }
 0x249   : > { %v2537_v22 = vpop.f32.mrb[19].mxu0  ;;  %v2646_v43 = vadd.f32 %v3494_v27, %v2550_v39 }
 0x24a   : > { %v2549_v44 = vadd.f32 %v2537_v22, %v2466_v26  ;;  %v2644_v45 = vadd.f32 %v2630_v28, %v2548_v41 }
 0x24c   : > { %v2645_v46 = vadd.f32 %v2633_v32, %v2549_v44 }
 0x252   : > { %v3504_v49 = vpop.f32.mrb[20].mxu0 }
 0x253   : > { %v2734_v50 = vadd.f32 %v3504_v49, %v2646_v43  ;;  %v2718_v51 = vpop.f32.mrb[21].mxu0 }
 0x254   : > { %v2732_v52 = vadd.f32 %v2718_v51, %v2644_v45  ;;  %v3505_v53 = vpop.f32.mrb[22].mxu0 }
 0x255   : > { %v2721_v54 = vpop.f32.mrb[23].mxu0  ;;  %v2822_v55 = vadd.f32 %v3514_v33, %v2734_v50 }
 0x256   : > { %v2733_v56 = vadd.f32 %v2721_v54, %v2645_v46  ;;  %v2820_v57 = vadd.f32 %v2806_v35, %v2732_v52 }
 0x258   : > { %v2821_v59 = vadd.f32 %v2809_v37, %v2733_v56 }
 0x25e   : > { %v3524_v60 = vpop.f32.mrb[24].mxu0 }
 0x25f   : > { %v2921_v58 = vadd.f32 %v3524_v60, %v2822_v55  ;;  %v2905_v62 = vpop.f32.mrb[25].mxu0 }
 0x260   : > { %v2919_v63 = vadd.f32 %v2905_v62, %v2820_v57  ;;  %v3525_v29 = vpop.f32.mrb[26].mxu0 }
 0x261   : > { %v2931_v0 = vadd.f32 %v3236_v61, %v2921_v58  ;;  %v2908_v1 = vpop.f32.mrb[27].mxu0 }
 0x262   : > { %v2929_v2 = vadd.f32 %v3236_v61, %v2919_v63  ;;  %v2920_v3 = vadd.f32 %v2908_v1, %v2821_v59 }
 0x263   : > { %3240 = vst.msk [vmem:[%s244_s20 + $0xa] sm:$0x3c] %vm2943_vm7, %v2931_v0 }
 0x264   : > { %2933 = vst.msk [vmem:[%s244_s20] sm:$0xf] %vm2932_vm8, %v2929_v2  ;;  %v2930_v4 = vadd.f32 %v3236_v61, %v2920_v3 }
 0x265   : > { %3237 = vst.msk [vmem:[%s244_s20 - $0x2] sm:$0xc0] %vm2935_vm9, %v2929_v2 }
 0x266   : > { %3238 = vst.msk [vmem:[%s244_s20 + $0x6] sm:$0x3] %vm2937_vm10, %v2930_v4 }
 0x267   : > { %3239 = vst.msk [vmem:[%s244_s20 + $0x4] sm:$0xf0] %vm2940_vm11, %v2930_v4 }
 0x268   : > { %3751 = shalt.err (!%p3748_p3)
}
 0x269   : > { %s3752_s14 = scalar_lea.hbm %s4293_s10, 256  ;;  %s3756_s17 = scalar_lea.hbm %s4344_s6, 512 }
 0x26a   : > { %p3753_p4 = scmp.ne.s32.totalorder %s4293_s10, %s3752_s14  ;;  %p3757_p9 = scmp.lt.u32.totalorder %s4293_s10, %s4344_s6 }
 0x26b   : > { %p3758_p10 = scmp.lt.u32.totalorder %s3756_s17, %s3752_s14  ;;  %p3760_p12 = scmp.lt.u32.totalorder %s3752_s14, %s4293_s10 }
 0x26c   : > { %p3754_p7 = pnand %p3753_p4, %p3879_p5 }
 0x26d   : > { %p3759_p11 = por %p3758_p10, %p3757_p9 }
 0x26e   : > { %p3755_p8 = pneg %p3754_p7 }
 0x26f   : > { %p3761_p13 = por %p3760_p12, %p3759_p11 }
 0x271   : > { %p3762_p0 = pnand %p3761_p13, %p3755_p8 }
 0x273   : > { %3765 = shalt.err (!%p3762_p0)
}
 0x274   : > { %s3804_s20 = smov 64   ;;  %s3805_s29 = smov 4  }
 0x275   : > { %3575 = dma.vmem_to_hbm [thread:$0]  (%p3879_p5), %s4295_s28, 256, %s4293_s10, %s4297_s25, %s3804_s20, %s3804_s20, %s3805_s29  }
 0x276 PF: > { %p3581_p1 = scmp.ge.s32.totalorder %s3800_s24, 2  ;;  %s2974_s9 = sand.u32 1, %s3788_s21  }
 0x277   : > { %s2975_s26 = scalar_lea.sflag [#allocation4], %s2974_s9 }
 0x278   : > { %p3578_p2 = pnand %p3581_p1, %p3883_p6 }
 0x27a   : > { %3783 = dma.done.wait (!%p3578_p2), %s2975_s26, 256  }
 0x27b   : > { %3785 = vsyncadd (!%p3578_p2), %s2975_s26, 4294967040  ;;  %p16_p3 = scmp.ge.s32.totalorder %s3866_s27, 4   ;;  %s4347_s21 = smov %s3792_s22 }
 0x27c   : > { %s4348_s22 = smov %s3796_s23  ;;  %s4349_s23 = smov %s3877_s30 }
 0x27d   : > { %s4350_s24 = smov %s3866_s27  ;;  %18 = sbr.rel (!%p16_p3) target bundleno = 3 (0x3), region = 91 }
 0x284   :  { %2980 = vsyncpa [#allocation4], 1 }
 0x285   :  { %2982 = vsyncpa [#allocation4 + $0x1], 1 }

</bundles_post_ra>
